<compile_context>
chip_gen: v7x
topology: tpu7x:2x2x1
jax: 0.10.0
libtpu: 0.0.40
codegen_flags: <defaults>
</compile_context>

<pallas_src>
import math
import functools

import jax
import jax.numpy as jnp
from jax import lax
from jax.experimental import pallas as pl
from jax.experimental.pallas import tpu as pltpu


# ----------------------------------------------------------------------------
# Tiling helpers
# ----------------------------------------------------------------------------

_MAX_TILE_T = 1024  # lane-dense (multiple of 128); tiny vs VMEM even on v7x (64 MiB)


def _time_tiling(T):
    """Return (tile, n_tiles) for the time axis."""
    if T > _MAX_TILE_T and T % _MAX_TILE_T == 0:
        return _MAX_TILE_T, T // _MAX_TILE_T
    # TODO(synk): pad arbitrary lengths up to a multiple of the tile; the test and
    # typical audio-chunk lengths hit one of the two branches above.
    return T, 1


def _window_time(x, tile, nt):
    """(B, C, T=nt*tile) -> overlapped windows (B, nt, C, tile+2) with K-1=2 halo."""
    xp = jnp.pad(x, ((0, 0), (0, 0), (1, 1)))
    starts = jnp.arange(nt) * tile
    idx = starts[:, None] + jnp.arange(tile + 2)[None, :]
    xw = xp[:, :, idx]                       # (B, C, nt, tile+2)
    return jnp.transpose(xw, (0, 2, 1, 3))   # (B, nt, C, tile+2)


def _cparams(n_axes):
    return pltpu.CompilerParams(
        dimension_semantics=("parallel",) * n_axes,
        vmem_limit_bytes=32 * 1024 * 1024,
    )


# ----------------------------------------------------------------------------
# Pallas kernels
# ----------------------------------------------------------------------------

def _inproj_kernel(x_ref, w_ref, b_ref, o_ref):
    # silu(Conv1d(2->C, k=1)(stack(audio, audio_low)))
    x = x_ref[0].astype(jnp.bfloat16)                                   # (2, tile)
    h = jnp.dot(w_ref[...], x, preferred_element_type=jnp.float32) + b_ref[...]
    o_ref[0] = h * jax.nn.sigmoid(h)


def input_projection(x2, w, b):
    B, _, T = x2.shape
    C = w.shape[0]
    tile, nt = _time_tiling(T)
    return pl.pallas_call(
        _inproj_kernel,
        out_shape=jax.ShapeDtypeStruct((B, C, T), jnp.float32),
        grid=(B, nt),
        in_specs=[
            pl.BlockSpec((1, 2, tile), lambda b_, t: (b_, 0, t)),
            pl.BlockSpec((C, 2), lambda b_, t: (0, 0)),
            pl.BlockSpec((C, 1), lambda b_, t: (0, 0)),
        ],
        out_specs=pl.BlockSpec((1, C, tile), lambda b_, t: (b_, 0, t)),
        compiler_params=_cparams(2),
    )(x2, w, b)


def _layer_pre_kernel(xw_ref, nl_ref, w_lcat_ref, w_g2l_ref, w_st1_ref,
                      outl_ref, l2g_ref, x1_ref, *, tile, T, cl, cg):
    t_idx = pl.program_id(1)
    C = cl + cg
    xw = xw_ref[0, 0]                                                   # (C, tile+2)
    col = lax.broadcasted_iota(jnp.int32, (C, tile + 2), 1)
    g = t_idx * tile + col - 1                                          # global sample idx
    # y = x + noise_level projection, with the conv zero-padding applied AFTER the add
    y = jnp.where((g >= 0) & (g < T), xw + nl_ref[0], 0.0)
    y_l, y_g = y[:cl], y[cl:]

    def patch(z):  # im2col: fold the 3 taps into the contraction dim (one matmul)
        return jnp.concatenate(
            [z[:, 0:tile], z[:, 1:tile + 1], z[:, 2:tile + 2]], axis=0
        ).astype(jnp.bfloat16)

    a_l = jnp.dot(w_lcat_ref[...], patch(y_l),
                  preferred_element_type=jnp.float32)                   # (4cg, tile)
    a_g = jnp.dot(w_g2l_ref[...], patch(y_g),
                  preferred_element_type=jnp.float32)                   # (2cg, tile)
    outl_ref[0] = a_l[:2 * cg] + a_g                                    # convl2l + convg2l
    l2g_ref[0] = a_l[2 * cg:]                                           # convl2g
    h = jnp.dot(w_st1_ref[...], y_g[:, 1:tile + 1].astype(jnp.bfloat16),
                preferred_element_type=jnp.float32)                     # st.conv1
    x1_ref[0] = h * jax.nn.sigmoid(h)                                   # silu


def layer_pre(x, nl, lw):
    B, C, T = x.shape
    cg = C // 2
    cl = C - cg
    tile, nt = _time_tiling(T)
    xw = _window_time(x, tile, nt)
    nl3 = nl[:, :, None]
    kernel = functools.partial(_layer_pre_kernel, tile=tile, T=T, cl=cl, cg=cg)
    return pl.pallas_call(
        kernel,
        out_shape=(jax.ShapeDtypeStruct((B, 2 * cg, T), jnp.float32),
                   jax.ShapeDtypeStruct((B, 2 * cg, T), jnp.float32),
                   jax.ShapeDtypeStruct((B, cg, T), jnp.float32)),
        grid=(B, nt),
        in_specs=[
            pl.BlockSpec((1, 1, C, tile + 2), lambda b_, t: (b_, t, 0, 0)),
            pl.BlockSpec((1, C, 1), lambda b_, t: (b_, 0, 0)),
            pl.BlockSpec((4 * cg, 3 * cl), lambda b_, t: (0, 0)),
            pl.BlockSpec((2 * cg, 3 * cg), lambda b_, t: (0, 0)),
            pl.BlockSpec((cg, cg), lambda b_, t: (0, 0)),
        ],
        out_specs=(
            pl.BlockSpec((1, 2 * cg, tile), lambda b_, t: (b_, 0, t)),
            pl.BlockSpec((1, 2 * cg, tile), lambda b_, t: (b_, 0, t)),
            pl.BlockSpec((1, cg, tile), lambda b_, t: (b_, 0, t)),
        ),
        compiler_params=_cparams(2),
    )(xw, nl3, lw["w_ll_lg"], lw["w_g2l"], lw["w_st1"])


def _spectral_kernel(ff_ref, sc_ref, sh_ref, w_ref, o_ref):
    # FiLM modulation + ReLU (f32) + 1x1 Conv2d channel matmul (bf16 -> f32 acc)
    mod = jnp.maximum(ff_ref[0] * sc_ref[0] + sh_ref[0], 0.0)
    o_ref[0] = jnp.dot(w_ref[...], mod.astype(jnp.bfloat16),
                       preferred_element_type=jnp.float32)


def spectral_conv(ff, scale, shift, w):
    B, Csp, FT = ff.shape
    return pl.pallas_call(
        _spectral_kernel,
        out_shape=jax.ShapeDtypeStruct((B, Csp, FT), jnp.float32),
        grid=(B,),
        in_specs=[
            pl.BlockSpec((1, Csp, FT), lambda b_: (b_, 0, 0)),
            pl.BlockSpec((1, Csp, FT), lambda b_: (b_, 0, 0)),
            pl.BlockSpec((1, Csp, FT), lambda b_: (b_, 0, 0)),
            pl.BlockSpec((Csp, Csp), lambda b_: (0, 0)),
        ],
        out_specs=pl.BlockSpec((1, Csp, FT), lambda b_: (b_, 0, 0)),
        compiler_params=_cparams(1),
    )(ff, scale, shift, w)


def _layer_post_kernel(x_ref, skip_ref, x1_ref, fu_ref, l2g_ref, outl_ref,
                       w_st2_ref, w_outp_ref, b_outp_ref,
                       xnew_ref, skipnew_ref, *, C, cg):
    st_in = (x1_ref[0] + fu_ref[0]).astype(jnp.bfloat16)                # (cg, tile)
    st = jnp.dot(w_st2_ref[...], st_in, preferred_element_type=jnp.float32)
    out_g = l2g_ref[0] + st
    out_l = outl_ref[0]
    gate = jnp.concatenate([out_l[:cg], out_g[:cg]], axis=0)            # (C, tile)
    filt = jnp.concatenate([out_l[cg:], out_g[cg:]], axis=0)
    yact = jax.nn.sigmoid(gate) * jnp.tanh(filt)
    z = jnp.dot(w_outp_ref[...], yact.astype(jnp.bfloat16),
                preferred_element_type=jnp.float32) + b_outp_ref[...]   # (2C, tile)
    xnew_ref[0] = (x_ref[0] + z[:C]) * (1.0 / math.sqrt(2.0))
    skipnew_ref[0] = skip_ref[0] + z[C:]                                # skip accumulated in-kernel


def layer_post(x, skip, x1, fu, l2g, out_l, lw):
    B, C, T = x.shape
    cg = C // 2
    tile, nt = _time_tiling(T)
    kernel = functools.partial(_layer_post_kernel, C=C, cg=cg)
    tspec = lambda ch: pl.BlockSpec((1, ch, tile), lambda b_, t: (b_, 0, t))
    return pl.pallas_call(
        kernel,
        out_shape=(jax.ShapeDtypeStruct((B, C, T), jnp.float32),
                   jax.ShapeDtypeStruct((B, C, T), jnp.float32)),
        grid=(B, nt),
        in_specs=[
            tspec(C), tspec(C), tspec(cg), tspec(cg), tspec(2 * cg), tspec(2 * cg),
            pl.BlockSpec((2 * cg, cg), lambda b_, t: (0, 0)),
            pl.BlockSpec((2 * C, C), lambda b_, t: (0, 0)),
            pl.BlockSpec((2 * C, 1), lambda b_, t: (0, 0)),
        ],
        out_specs=(tspec(C), tspec(C)),
        input_output_aliases={0: 0, 1: 1},   # x / skip updated in place
        compiler_params=_cparams(2),
    )(x, skip, x1, fu, l2g, out_l, lw["w_st2"], lw["w_outp"], lw["b_outp"])


def _final_kernel(skip_ref, w_skip_ref, b_skip_ref, w_out_ref, b_out_ref, o_ref):
    # skip/sqrt(L) folded into w_skip at pack time
    h = jnp.dot(w_skip_ref[...], skip_ref[0].astype(jnp.bfloat16),
                preferred_element_type=jnp.float32) + b_skip_ref[...]
    h = h * jax.nn.sigmoid(h)
    o_ref[0] = jnp.dot(w_out_ref[...], h.astype(jnp.bfloat16),
                       preferred_element_type=jnp.float32) + b_out_ref[...]


def output_head(skip, w_skip, b_skip, w_out, b_out):
    B, C, T = skip.shape
    tile, nt = _time_tiling(T)
    return pl.pallas_call(
        _final_kernel,
        out_shape=jax.ShapeDtypeStruct((B, 1, T), jnp.float32),
        grid=(B, nt),
        in_specs=[
            pl.BlockSpec((1, C, tile), lambda b_, t: (b_, 0, t)),
            pl.BlockSpec((C, C), lambda b_, t: (0, 0)),
            pl.BlockSpec((C, 1), lambda b_, t: (0, 0)),
            pl.BlockSpec((1, C), lambda b_, t: (0, 0)),
            pl.BlockSpec((1, 1), lambda b_, t: (0, 0)),
        ],
        out_specs=pl.BlockSpec((1, 1, tile), lambda b_, t: (b_, 0, t)),
        compiler_params=_cparams(2),
    )(skip, w_skip, b_skip, w_out, b_out)


# ----------------------------------------------------------------------------
# Plain-JAX glue: STFT/ISTFT, diffusion embedding, sub-vreg band convs
# ----------------------------------------------------------------------------

def hann_window(n):
    return 0.5 * (1.0 - jnp.cos(2.0 * jnp.pi * jnp.arange(n, dtype=jnp.float32) / n))


def stft(x, n_fft, hop, window):
    pad = n_fft // 2
    xp = jnp.pad(x, ((0, 0), (pad, pad)), mode="reflect")
    n_frames = 1 + (xp.shape[1] - n_fft) // hop
    idx = jnp.arange(n_frames)[:, None] * hop + jnp.arange(n_fft)[None, :]
    frames = xp[:, idx] * window[None, None, :]
    spec = jnp.fft.rfft(frames, axis=-1) / math.sqrt(n_fft)     # normalized=True
    return jnp.transpose(spec, (0, 2, 1))                       # (N, F, frames)


def istft(real, imag, n_fft, hop, window, length):
    N, _, n_frames = real.shape
    spec = (real + 1j * imag) * math.sqrt(n_fft)
    frames = jnp.fft.irfft(spec, n=n_fft, axis=1)               # (N, n_fft, frames)
    frames = frames * window[None, :, None]
    out_len = n_fft + hop * (n_frames - 1)
    idx = jnp.arange(n_frames)[:, None] * hop + jnp.arange(n_fft)[None, :]
    sig = jnp.zeros((N, out_len), jnp.float32)
    sig = sig.at[:, idx].add(jnp.transpose(frames, (0, 2, 1)))
    env = jnp.zeros((out_len,), jnp.float32)
    env = env.at[idx].add(jnp.broadcast_to(window ** 2, (n_frames, n_fft)))
    start = n_fft // 2
    sig = sig[:, start:start + length]
    env = jnp.maximum(env[start:start + length], 1e-11)
    return sig / env[None, :]


def _conv1d_jax(x, w, b):
    # tiny 'same' K=3 conv over the 9-bin band axis -- sub-vreg, left to XLA
    K = w.shape[-1]
    L = x.shape[-1]
    xp = jnp.pad(x, ((0, 0), (0, 0), (K // 2, K // 2)))
    out = sum(jnp.einsum("oi,bil->bol", w[:, :, k], xp[:, :, k:k + L]) for k in range(K))
    if b is not None:
        out = out + b[None, :, None]
    return out


def diffusion_embedding(dp, noise_level, hp):
    half = hp["pos_emb_channels"] // 2
    c = math.log(10000.0) / (half - 1)
    freqs = jnp.exp(jnp.arange(half, dtype=jnp.float32) * -c)
    e = hp["pos_emb_scale"] * noise_level[:, None] * freqs[None, :]
    e = jnp.concatenate([jnp.sin(e), jnp.cos(e)], axis=-1)
    e = jax.nn.silu(e @ dp["w1"].T + dp["b1"])
    e = jax.nn.silu(e @ dp["w2"].T + dp["b2"])
    return e


def fourier_unit(lw, x1, gamma, beta, hp):
    B, cg, T = x1.shape
    n_fft, hop = hp["filter_length"], hp["hop_length"]
    window = hann_window(hp["win_length"])
    spec = stft(x1.reshape(B * cg, T), n_fft, hop, window)      # (B*cg, F, Tf) complex
    F_, Tf = spec.shape[1], spec.shape[2]
    ff4 = jnp.stack([spec.real, spec.imag], axis=1).reshape(B, 2 * cg, F_, Tf)
    scale = jnp.broadcast_to((1.0 + gamma)[..., None], ff4.shape).reshape(B, 2 * cg, F_ * Tf)
    shift = jnp.broadcast_to(beta[..., None], ff4.shape).reshape(B, 2 * cg, F_ * Tf)
    ffc = spectral_conv(ff4.reshape(B, 2 * cg, F_ * Tf), scale, shift, lw["w_fu"])
    ff2 = ffc.reshape(B * cg, 2, F_, Tf)
    out = istft(ff2[:, 0], ff2[:, 1], n_fft, hop, window, length=hop * (Tf - 1))
    return out.reshape(B, cg, T)


# ----------------------------------------------------------------------------
# Full forward
# ----------------------------------------------------------------------------

def nuwave2_forward(packed, audio, audio_low, band, noise_level, hp):
    x2 = jnp.stack([audio, audio_low], axis=1).astype(jnp.float32)     # (B, 2, T)
    x = input_projection(x2, packed["inp_w"], packed["inp_b"])
    emb = diffusion_embedding(packed["demb"], noise_level, hp)
    band_c = jnp.transpose(jax.nn.one_hot(band, 2, dtype=jnp.float32), (0, 2, 1))

    skip = jnp.zeros_like(x)
    for lw in packed["layers"]:
        # sub-vreg glue in plain JAX (per perf review)
        nl = emb @ lw["dp_w_t"] + lw["dp_b"]                           # (B, C)
        actv = jax.nn.silu(_conv1d_jax(band_c, lw["bsft_shared_w"], lw["bsft_shared_b"]))
        gamma = _conv1d_jax(actv, lw["bsft_gamma_w"], lw["bsft_gamma_b"])
        beta = _conv1d_jax(actv, lw["bsft_beta_w"], lw["bsft_beta_b"])

        out_l, l2g, x1 = layer_pre(x, nl, lw)                          # fused Pallas
        fu_out = fourier_unit(lw, x1, gamma, beta, hp)                 # FFT + fused spectral
        x, skip = layer_post(x, skip, x1, fu_out, l2g, out_l, lw)      # fused Pallas

    out = output_head(skip, packed["skip_w"], packed["skip_b"],
                      packed["out_w"], packed["out_b"])
    return out[:, 0, :]


# ----------------------------------------------------------------------------
# Params: torch-layout init + one-time packing for the kernels
# ----------------------------------------------------------------------------

def init_params(key, hp):
    keys = iter(jax.random.split(key, 256))
    nk = lambda: next(keys)
    conv_w = lambda co, ci, k: jax.random.normal(nk(), (co, ci, k), jnp.float32) * math.sqrt(2.0 / (ci * k))
    lin_w = lambda o, i: jax.random.normal(nk(), (o, i), jnp.float32) * math.sqrt(1.0 / i)
    bias = lambda n: jax.random.normal(nk(), (n,), jnp.float32) * 0.02

    C = hp["residual_channels"]; E = hp["pos_emb_dim"]; P = hp["pos_emb_channels"]
    nh = hp["bsft_channels"]; cg = C // 2
    params = {
        "inp": {"w": conv_w(C, 2, 1), "b": bias(C)},
        "demb": {"w1": lin_w(E, P), "b1": bias(E), "w2": lin_w(E, E), "b2": bias(E)},
        "skip": {"w": conv_w(C, C, 1), "b": bias(C)},
        "out": {"w": conv_w(1, C, 1), "b": bias(1)},
        "layers": [],
    }
    for _ in range(hp["residual_layers"]):
        params["layers"].append({
            "dp_w": lin_w(C, E), "dp_b": bias(C),
            "convl2l": conv_w(2 * cg, cg, 3),
            "convl2g": conv_w(2 * cg, cg, 3),
            "convg2l": conv_w(2 * cg, cg, 3),
            "st_conv1": conv_w(cg, cg, 1),
            "st_conv2": conv_w(2 * cg, cg, 1),
            "fu_conv": conv_w(2 * cg, 2 * cg, 1),
            "bsft_shared_w": conv_w(nh, 2, 3), "bsft_shared_b": bias(nh),
            "bsft_gamma_w": conv_w(2 * cg, nh, 3), "bsft_gamma_b": bias(2 * cg),
            "bsft_beta_w": conv_w(2 * cg, nh, 3), "bsft_beta_b": bias(2 * cg),
            "outp_w": conv_w(2 * C, C, 1), "outp_b": bias(2 * C),
        })
    return params


def _pack_k3(w):
    # (Cout, Cin, 3) -> (Cout, 3*Cin) matching the in-kernel im2col patch order
    co, ci, k = w.shape
    return jnp.transpose(w, (0, 2, 1)).reshape(co, k * ci)


def pack_params(params, hp):
    L = len(params["layers"])
    C = hp["residual_channels"]
    packed = {
        "inp_w": params["inp"]["w"][:, :, 0].astype(jnp.bfloat16),
        "inp_b": params["inp"]["b"].reshape(C, 1).astype(jnp.float32),
        "demb": params["demb"],
        "skip_w": (params["skip"]["w"][:, :, 0] / math.sqrt(float(L))).astype(jnp.bfloat16),
        "skip_b": params["skip"]["b"].reshape(C, 1).astype(jnp.float32),
        "out_w": params["out"]["w"][:, :, 0].astype(jnp.bfloat16),
        "out_b": params["out"]["b"].reshape(1, 1).astype(jnp.float32),
        "layers": [],
    }
    for lp in params["layers"]:
        packed["layers"].append({
            "dp_w_t": lp["dp_w"].T, "dp_b": lp["dp_b"],
            "w_ll_lg": jnp.concatenate(
                [_pack_k3(lp["convl2l"]), _pack_k3(lp["convl2g"])], axis=0).astype(jnp.bfloat16),
            "w_g2l": _pack_k3(lp["convg2l"]).astype(jnp.bfloat16),
            "w_st1": lp["st_conv1"][:, :, 0].astype(jnp.bfloat16),
            "w_st2": lp["st_conv2"][:, :, 0].astype(jnp.bfloat16),
            "w_fu": lp["fu_conv"][:, :, 0].astype(jnp.bfloat16),
            "w_outp": lp["outp_w"][:, :, 0].astype(jnp.bfloat16),
            "b_outp": lp["outp_b"].reshape(2 * C, 1).astype(jnp.float32),
            "bsft_shared_w": lp["bsft_shared_w"], "bsft_shared_b": lp["bsft_shared_b"],
            "bsft_gamma_w": lp["bsft_gamma_w"], "bsft_gamma_b": lp["bsft_gamma_b"],
            "bsft_beta_w": lp["bsft_beta_w"], "bsft_beta_b": lp["bsft_beta_b"],
        })
    return packed


if __name__ == "__main__":
    hp = dict(residual_channels=8, pos_emb_dim=16, pos_emb_channels=8,
              pos_emb_scale=50000.0, bsft_channels=4, residual_layers=2,
              filter_length=16, hop_length=4, win_length=16, sampling_rate=16000)

    key = jax.random.PRNGKey(0)
    kp, ka, kl, kn = jax.random.split(key, 4)
    B, T = 2, 64
    n_freq = hp["filter_length"] // 2 + 1                      # 9

    params = init_params(kp, hp)
    packed = pack_params(params, hp)                           # one-time weight packing
    audio = jax.random.normal(ka, (B, T), jnp.float32)
    audio_low = jax.random.normal(kl, (B, T), jnp.float32)
    band = jnp.tile((jnp.arange(n_freq) < n_freq // 2).astype(jnp.int32)[None, :], (B, 1))
    noise_level = jax.random.uniform(kn, (B,), jnp.float32)

    fwd = jax.jit(lambda p, a, al, bd, nl: nuwave2_forward(p, a, al, bd, nl, hp))
    out = fwd(packed, audio, audio_low, band, noise_level)
    out = jax.block_until_ready(out)
    assert out.shape == (B, T), out.shape
    assert bool(jnp.all(jnp.isfinite(out)))
    print("KERNEL_OK")
</pallas_src>

<mosaic_0001>
module attributes {stable_mosaic.version = 11 : i64} {
  func.func private @main(%arg0: i32) attributes {dimension_semantics = [#tpu.dimension_semantics<core_parallel>], iteration_bounds = array<i64: 2>, tpu.core_type = #tpu.core_type<sc_scalar_subcore>, window_params = []} {
    return
  }
}

module attributes {stable_mosaic.version = 11 : i64} {
  func.func private @main(%arg0: i32) attributes {dimension_semantics = [#tpu.dimension_semantics<core_parallel>], iteration_bounds = array<i64: 2>, tpu.core_type = #tpu.core_type<sc_scalar_subcore>, window_params = []} {
    return
  }
}

module attributes {stable_mosaic.version = 11 : i64} {
  func.func @_layer_pre_kernel(%arg0: i32, %arg1: i32, %arg2: memref<1x1x8x66xf32, #tpu.memory_space<vmem>>, %arg3: memref<1x8x1xf32, #tpu.memory_space<vmem>>, %arg4: memref<16x12xbf16, #tpu.memory_space<vmem>>, %arg5: memref<8x12xbf16, #tpu.memory_space<vmem>>, %arg6: memref<4x4xbf16, #tpu.memory_space<vmem>>, %arg7: memref<1x8x64xf32, #tpu.memory_space<vmem>>, %arg8: memref<1x8x64xf32, #tpu.memory_space<vmem>>, %arg9: memref<1x4x64xf32, #tpu.memory_space<vmem>>) attributes {dimension_semantics = [#tpu.dimension_semantics<parallel>, #tpu.dimension_semantics<parallel>], iteration_bounds = array<i64: 2, 1>, scalar_prefetch = 0 : i64, scratch_operands = 0 : i64, tpu.core_type = #tpu.core_type<tc>, window_params = [{transform_indices = @transform_0, window_bounds = array<i64: 1, 1, 8, 66>}, {transform_indices = @transform_1, window_bounds = array<i64: 1, 8, 1>}, {pipeline_mode = #tpu.pipeline_mode<synchronous>, transform_indices = @transform_2, window_bounds = array<i64: 16, 12>}, {pipeline_mode = #tpu.pipeline_mode<synchronous>, transform_indices = @transform_3, window_bounds = array<i64: 8, 12>}, {pipeline_mode = #tpu.pipeline_mode<synchronous>, transform_indices = @transform_4, window_bounds = array<i64: 4, 4>}, {transform_indices = @transform_5, window_bounds = array<i64: 1, 8, 64>}, {transform_indices = @transform_6, window_bounds = array<i64: 1, 8, 64>}, {transform_indices = @transform_7, window_bounds = array<i64: 1, 4, 64>}]} {
    %c0 = arith.constant 0 : index
    %c0_0 = arith.constant 0 : index
    %c0_1 = arith.constant 0 : index
    %c0_2 = arith.constant 0 : index
    %0 = vector.load %arg2[%c0, %c0_0, %c0_1, %c0_2] : memref<1x1x8x66xf32, #tpu.memory_space<vmem>>, vector<1x1x8x66xf32>
    %1 = vector.shape_cast %0 : vector<1x1x8x66xf32> to vector<8x66xf32>
    %2 = tpu.iota {dimensions = array<i32: 1>} : vector<8x66xi32>
    %c64_i32 = arith.constant 64 : i32
    %3 = arith.muli %arg1, %c64_i32 : i32
    %4 = vector.broadcast %3 : i32 to vector<8x66xi32>
    %5 = arith.addi %4, %2 : vector<8x66xi32>
    %c1_i32 = arith.constant 1 : i32
    %6 = vector.broadcast %c1_i32 : i32 to vector<8x66xi32>
    %7 = arith.subi %5, %6 : vector<8x66xi32>
    %c0_i32 = arith.constant 0 : i32
    %8 = vector.broadcast %c0_i32 : i32 to vector<8x66xi32>
    %9 = arith.cmpi sge, %7, %8 : vector<8x66xi32>
    %c64_i32_3 = arith.constant 64 : i32
    %10 = vector.broadcast %c64_i32_3 : i32 to vector<8x66xi32>
    %11 = arith.cmpi slt, %7, %10 : vector<8x66xi32>
    %12 = arith.andi %9, %11 : vector<8x66xi1>
    %c0_4 = arith.constant 0 : index
    %c0_5 = arith.constant 0 : index
    %c0_6 = arith.constant 0 : index
    %13 = vector.load %arg3[%c0_4, %c0_5, %c0_6] : memref<1x8x1xf32, #tpu.memory_space<vmem>>, vector<1x8x1xf32>
    %14 = vector.shape_cast %13 : vector<1x8x1xf32> to vector<8x1xf32>
    %15 = vector.broadcast %14 : vector<8x1xf32> to vector<8x66xf32>
    %16 = arith.addf %1, %15 : vector<8x66xf32>
    %cst = arith.constant 0.000000e+00 : f32
    %17 = vector.broadcast %cst : f32 to vector<8x66xf32>
    %18 = arith.select %12, %16, %17 : vector<8x66xi1>, vector<8x66xf32>
    %19 = vector.extract_strided_slice %18 {offsets = [0, 0], sizes = [4, 66], strides = [1, 1]} : vector<8x66xf32> to vector<4x66xf32>
    %20 = vector.extract_strided_slice %18 {offsets = [4, 0], sizes = [4, 66], strides = [1, 1]} : vector<8x66xf32> to vector<4x66xf32>
    %c0_7 = arith.constant 0 : index
    %c0_8 = arith.constant 0 : index
    %21 = vector.load %arg4[%c0_7, %c0_8] : memref<16x12xbf16, #tpu.memory_space<vmem>>, vector<16x12xbf16>
    %22 = vector.extract_strided_slice %19 {offsets = [0, 0], sizes = [4, 64], strides = [1, 1]} : vector<4x66xf32> to vector<4x64xf32>
    %23 = vector.extract_strided_slice %19 {offsets = [0, 1], sizes = [4, 64], strides = [1, 1]} : vector<4x66xf32> to vector<4x64xf32>
    %24 = vector.extract_strided_slice %19 {offsets = [0, 2], sizes = [4, 64], strides = [1, 1]} : vector<4x66xf32> to vector<4x64xf32>
    %25 = tpu.concatenate %22, %23, %24 in 0 : vector<4x64xf32>, vector<4x64xf32>, vector<4x64xf32> -> vector<12x64xf32>
    %26 = arith.truncf %25 : vector<12x64xf32> to vector<12x64xbf16>
    %cst_9 = arith.constant dense<0.000000e+00> : vector<16x64xf32>
    %27 = tpu.matmul %21, %26, %cst_9 {dimension_numbers = #tpu.dot_dimension_numbers<[1], [0], [0], [1], [0, 0, 1, 1], [], []>} : vector<16x12xbf16>, vector<12x64xbf16>, vector<16x64xf32> -> vector<16x64xf32>
    %c0_10 = arith.constant 0 : index
    %c0_11 = arith.constant 0 : index
    %28 = vector.load %arg5[%c0_10, %c0_11] : memref<8x12xbf16, #tpu.memory_space<vmem>>, vector<8x12xbf16>
    %29 = vector.extract_strided_slice %20 {offsets = [0, 0], sizes = [4, 64], strides = [1, 1]} : vector<4x66xf32> to vector<4x64xf32>
    %30 = vector.extract_strided_slice %20 {offsets = [0, 1], sizes = [4, 64], strides = [1, 1]} : vector<4x66xf32> to vector<4x64xf32>
    %31 = vector.extract_strided_slice %20 {offsets = [0, 2], sizes = [4, 64], strides = [1, 1]} : vector<4x66xf32> to vector<4x64xf32>
    %32 = tpu.concatenate %29, %30, %31 in 0 : vector<4x64xf32>, vector<4x64xf32>, vector<4x64xf32> -> vector<12x64xf32>
    %33 = arith.truncf %32 : vector<12x64xf32> to vector<12x64xbf16>
    %cst_12 = arith.constant dense<0.000000e+00> : vector<8x64xf32>
    %34 = tpu.matmul %28, %33, %cst_12 {dimension_numbers = #tpu.dot_dimension_numbers<[1], [0], [0], [1], [0, 0, 1, 1], [], []>} : vector<8x12xbf16>, vector<12x64xbf16>, vector<8x64xf32> -> vector<8x64xf32>
    %35 = vector.extract_strided_slice %27 {offsets = [0, 0], sizes = [8, 64], strides = [1, 1]} : vector<16x64xf32> to vector<8x64xf32>
    %36 = arith.addf %35, %34 : vector<8x64xf32>
    %c0_13 = arith.constant 0 : index
    %c0_14 = arith.constant 0 : index
    %c0_15 = arith.constant 0 : index
    %37 = vector.load %arg7[%c0_13, %c0_14, %c0_15] : memref<1x8x64xf32, #tpu.memory_space<vmem>>, vector<1x8x64xf32>
    %38 = vector.shape_cast %37 : vector<1x8x64xf32> to vector<8x64xf32>
    %39 = vector.shape_cast %36 : vector<8x64xf32> to vector<1x8x64xf32>
    tpu.vector_store %arg7[%c0_13, %c0_14, %c0_15], %39 {strides = array<i32>} : memref<1x8x64xf32, #tpu.memory_space<vmem>>, vector<1x8x64xf32>,
    %40 = vector.extract_strided_slice %27 {offsets = [8, 0], sizes = [8, 64], strides = [1, 1]} : vector<16x64xf32> to vector<8x64xf32>
    %c0_16 = arith.constant 0 : index
    %c0_17 = arith.constant 0 : index
    %c0_18 = arith.constant 0 : index
    %41 = vector.load %arg8[%c0_16, %c0_17, %c0_18] : memref<1x8x64xf32, #tpu.memory_space<vmem>>, vector<1x8x64xf32>
    %42 = vector.shape_cast %41 : vector<1x8x64xf32> to vector<8x64xf32>
    %43 = vector.shape_cast %40 : vector<8x64xf32> to vector<1x8x64xf32>
    tpu.vector_store %arg8[%c0_16, %c0_17, %c0_18], %43 {strides = array<i32>} : memref<1x8x64xf32, #tpu.memory_space<vmem>>, vector<1x8x64xf32>,
    %c0_19 = arith.constant 0 : index
    %c0_20 = arith.constant 0 : index
    %44 = vector.load %arg6[%c0_19, %c0_20] : memref<4x4xbf16, #tpu.memory_space<vmem>>, vector<4x4xbf16>
    %45 = vector.extract_strided_slice %20 {offsets = [0, 1], sizes = [4, 64], strides = [1, 1]} : vector<4x66xf32> to vector<4x64xf32>
    %46 = arith.truncf %45 : vector<4x64xf32> to vector<4x64xbf16>
    %cst_21 = arith.constant dense<0.000000e+00> : vector<4x64xf32>
    %47 = tpu.matmul %44, %46, %cst_21 {dimension_numbers = #tpu.dot_dimension_numbers<[1], [0], [0], [1], [0, 0, 1, 1], [], []>} : vector<4x4xbf16>, vector<4x64xbf16>, vector<4x64xf32> -> vector<4x64xf32>
    %48 = arith.negf %47 : vector<4x64xf32>
    %49 = math.exp %48 : vector<4x64xf32>
    %cst_22 = arith.constant 1.000000e+00 : f32
    %50 = vector.broadcast %cst_22 : f32 to vector<4x64xf32>
    %51 = arith.addf %50, %49 : vector<4x64xf32>
    %52 = arith.divf %50, %51 : vector<4x64xf32>
    %53 = arith.mulf %47, %52 : vector<4x64xf32>
    %c0_23 = arith.constant 0 : index
    %c0_24 = arith.constant 0 : index
    %c0_25 = arith.constant 0 : index
    %54 = vector.load %arg9[%c0_23, %c0_24, %c0_25] : memref<1x4x64xf32, #tpu.memory_space<vmem>>, vector<1x4x64xf32>
    %55 = vector.shape_cast %54 : vector<1x4x64xf32> to vector<4x64xf32>
    %56 = vector.shape_cast %53 : vector<4x64xf32> to vector<1x4x64xf32>
    tpu.vector_store %arg9[%c0_23, %c0_24, %c0_25], %56 {strides = array<i32>} : memref<1x4x64xf32, #tpu.memory_space<vmem>>, vector<1x4x64xf32>,
    return
  }
  func.func @transform_0(%arg0: i32, %arg1: i32) -> (i32, i32, i32, i32) {
    %c0_i32 = arith.constant 0 : i32
    %c0_i32_0 = arith.constant 0 : i32
    %c0_i32_1 = arith.constant 0 : i32
    return %arg0, %arg1, %c0_i32, %c0_i32_0 : i32, i32, i32, i32
  }
  func.func @transform_1(%arg0: i32, %arg1: i32) -> (i32, i32, i32) {
    %c0_i32 = arith.constant 0 : i32
    %c0_i32_0 = arith.constant 0 : i32
    %c0_i32_1 = arith.constant 0 : i32
    return %arg0, %c0_i32, %c0_i32_0 : i32, i32, i32
  }
  func.func @transform_2(%arg0: i32, %arg1: i32) -> (i32, i32) {
    %c0_i32 = arith.constant 0 : i32
    %c0_i32_0 = arith.constant 0 : i32
    %c0_i32_1 = arith.constant 0 : i32
    return %c0_i32, %c0_i32_0 : i32, i32
  }
  func.func @transform_3(%arg0: i32, %arg1: i32) -> (i32, i32) {
    %c0_i32 = arith.constant 0 : i32
    %c0_i32_0 = arith.constant 0 : i32
    %c0_i32_1 = arith.constant 0 : i32
    return %c0_i32, %c0_i32_0 : i32, i32
  }
  func.func @transform_4(%arg0: i32, %arg1: i32) -> (i32, i32) {
    %c0_i32 = arith.constant 0 : i32
    %c0_i32_0 = arith.constant 0 : i32
    %c0_i32_1 = arith.constant 0 : i32
    return %c0_i32, %c0_i32_0 : i32, i32
  }
  func.func @transform_5(%arg0: i32, %arg1: i32) -> (i32, i32, i32) {
    %c0_i32 = arith.constant 0 : i32
    %c0_i32_0 = arith.constant 0 : i32
    return %arg0, %c0_i32, %arg1 : i32, i32, i32
  }
  func.func @transform_6(%arg0: i32, %arg1: i32) -> (i32, i32, i32) {
    %c0_i32 = arith.constant 0 : i32
    %c0_i32_0 = arith.constant 0 : i32
    return %arg0, %c0_i32, %arg1 : i32, i32, i32
  }
  func.func @transform_7(%arg0: i32, %arg1: i32) -> (i32, i32, i32) {
    %c0_i32 = arith.constant 0 : i32
    %c0_i32_0 = arith.constant 0 : i32
    return %arg0, %c0_i32, %arg1 : i32, i32, i32
  }
}

module attributes {stable_mosaic.version = 11 : i64} {
  func.func @_inproj_kernel(%arg0: i32, %arg1: i32, %arg2: memref<1x2x64xf32, #tpu.memory_space<vmem>>, %arg3: memref<8x2xbf16, #tpu.memory_space<vmem>>, %arg4: memref<8x1xf32, #tpu.memory_space<vmem>>, %arg5: memref<1x8x64xf32, #tpu.memory_space<vmem>>) attributes {dimension_semantics = [#tpu.dimension_semantics<parallel>, #tpu.dimension_semantics<parallel>], iteration_bounds = array<i64: 2, 1>, scalar_prefetch = 0 : i64, scratch_operands = 0 : i64, tpu.core_type = #tpu.core_type<tc>, window_params = [{transform_indices = @transform_0, window_bounds = array<i64: 1, 2, 64>}, {pipeline_mode = #tpu.pipeline_mode<synchronous>, transform_indices = @transform_1, window_bounds = array<i64: 8, 2>}, {pipeline_mode = #tpu.pipeline_mode<synchronous>, transform_indices = @transform_2, window_bounds = array<i64: 8, 1>}, {transform_indices = @transform_3, window_bounds = array<i64: 1, 8, 64>}]} {
    %c0 = arith.constant 0 : index
    %c0_0 = arith.constant 0 : index
    %c0_1 = arith.constant 0 : index
    %0 = vector.load %arg2[%c0, %c0_0, %c0_1] : memref<1x2x64xf32, #tpu.memory_space<vmem>>, vector<1x2x64xf32>
    %1 = vector.shape_cast %0 : vector<1x2x64xf32> to vector<2x64xf32>
    %2 = arith.truncf %1 : vector<2x64xf32> to vector<2x64xbf16>
    %c0_2 = arith.constant 0 : index
    %c0_3 = arith.constant 0 : index
    %3 = vector.load %arg3[%c0_2, %c0_3] : memref<8x2xbf16, #tpu.memory_space<vmem>>, vector<8x2xbf16>
    %cst = arith.constant dense<0.000000e+00> : vector<8x64xf32>
    %4 = tpu.matmul %3, %2, %cst {dimension_numbers = #tpu.dot_dimension_numbers<[1], [0], [0], [1], [0, 0, 1, 1], [], []>} : vector<8x2xbf16>, vector<2x64xbf16>, vector<8x64xf32> -> vector<8x64xf32>
    %c0_4 = arith.constant 0 : index
    %c0_5 = arith.constant 0 : index
    %5 = vector.load %arg4[%c0_4, %c0_5] : memref<8x1xf32, #tpu.memory_space<vmem>>, vector<8x1xf32>
    %6 = vector.broadcast %5 : vector<8x1xf32> to vector<8x64xf32>
    %7 = arith.addf %4, %6 : vector<8x64xf32>
    %8 = arith.negf %7 : vector<8x64xf32>
    %9 = math.exp %8 : vector<8x64xf32>
    %cst_6 = arith.constant 1.000000e+00 : f32
    %10 = vector.broadcast %cst_6 : f32 to vector<8x64xf32>
    %11 = arith.addf %10, %9 : vector<8x64xf32>
    %12 = arith.divf %10, %11 : vector<8x64xf32>
    %13 = arith.mulf %7, %12 : vector<8x64xf32>
    %c0_7 = arith.constant 0 : index
    %c0_8 = arith.constant 0 : index
    %c0_9 = arith.constant 0 : index
    %14 = vector.load %arg5[%c0_7, %c0_8, %c0_9] : memref<1x8x64xf32, #tpu.memory_space<vmem>>, vector<1x8x64xf32>
    %15 = vector.shape_cast %14 : vector<1x8x64xf32> to vector<8x64xf32>
    %16 = vector.shape_cast %13 : vector<8x64xf32> to vector<1x8x64xf32>
    tpu.vector_store %arg5[%c0_7, %c0_8, %c0_9], %16 {strides = array<i32>} : memref<1x8x64xf32, #tpu.memory_space<vmem>>, vector<1x8x64xf32>,
    return
  }
  func.func @transform_0(%arg0: i32, %arg1: i32) -> (i32, i32, i32) {
    %c0_i32 = arith.constant 0 : i32
    %c0_i32_0 = arith.constant 0 : i32
    return %arg0, %c0_i32, %arg1 : i32, i32, i32
  }
  func.func @transform_1(%arg0: i32, %arg1: i32) -> (i32, i32) {
    %c0_i32 = arith.constant 0 : i32
    %c0_i32_0 = arith.constant 0 : i32
    %c0_i32_1 = arith.constant 0 : i32
    return %c0_i32, %c0_i32_0 : i32, i32
  }
  func.func @transform_2(%arg0: i32, %arg1: i32) -> (i32, i32) {
    %c0_i32 = arith.constant 0 : i32
    %c0_i32_0 = arith.constant 0 : i32
    %c0_i32_1 = arith.constant 0 : i32
    return %c0_i32, %c0_i32_0 : i32, i32
  }
  func.func @transform_3(%arg0: i32, %arg1: i32) -> (i32, i32, i32) {
    %c0_i32 = arith.constant 0 : i32
    %c0_i32_0 = arith.constant 0 : i32
    return %arg0, %c0_i32, %arg1 : i32, i32, i32
  }
}

module attributes {stable_mosaic.version = 11 : i64} {
  func.func @_spectral_kernel(%arg0: i32, %arg1: memref<1x8x153xf32, #tpu.memory_space<vmem>>, %arg2: memref<1x8x153xf32, #tpu.memory_space<vmem>>, %arg3: memref<1x8x153xf32, #tpu.memory_space<vmem>>, %arg4: memref<8x8xbf16, #tpu.memory_space<vmem>>, %arg5: memref<1x8x153xf32, #tpu.memory_space<vmem>>) attributes {dimension_semantics = [#tpu.dimension_semantics<parallel>], iteration_bounds = array<i64: 2>, scalar_prefetch = 0 : i64, scratch_operands = 0 : i64, tpu.core_type = #tpu.core_type<tc>, window_params = [{transform_indices = @transform_0, window_bounds = array<i64: 1, 8, 153>}, {transform_indices = @transform_1, window_bounds = array<i64: 1, 8, 153>}, {transform_indices = @transform_2, window_bounds = array<i64: 1, 8, 153>}, {pipeline_mode = #tpu.pipeline_mode<synchronous>, transform_indices = @transform_3, window_bounds = array<i64: 8, 8>}, {transform_indices = @transform_4, window_bounds = array<i64: 1, 8, 153>}]} {
    %c0 = arith.constant 0 : index
    %c0_0 = arith.constant 0 : index
    %c0_1 = arith.constant 0 : index
    %0 = vector.load %arg1[%c0, %c0_0, %c0_1] : memref<1x8x153xf32, #tpu.memory_space<vmem>>, vector<1x8x153xf32>
    %1 = vector.shape_cast %0 : vector<1x8x153xf32> to vector<8x153xf32>
    %c0_2 = arith.constant 0 : index
    %c0_3 = arith.constant 0 : index
    %c0_4 = arith.constant 0 : index
    %2 = vector.load %arg2[%c0_2, %c0_3, %c0_4] : memref<1x8x153xf32, #tpu.memory_space<vmem>>, vector<1x8x153xf32>
    %3 = vector.shape_cast %2 : vector<1x8x153xf32> to vector<8x153xf32>
    %4 = arith.mulf %1, %3 : vector<8x153xf32>
    %c0_5 = arith.constant 0 : index
    %c0_6 = arith.constant 0 : index
    %c0_7 = arith.constant 0 : index
    %5 = vector.load %arg3[%c0_5, %c0_6, %c0_7] : memref<1x8x153xf32, #tpu.memory_space<vmem>>, vector<1x8x153xf32>
    %6 = vector.shape_cast %5 : vector<1x8x153xf32> to vector<8x153xf32>
    %7 = arith.addf %4, %6 : vector<8x153xf32>
    %cst = arith.constant 0.000000e+00 : f32
    %8 = vector.broadcast %cst : f32 to vector<8x153xf32>
    %9 = arith.maximumf %7, %8 : vector<8x153xf32>
    %c0_8 = arith.constant 0 : index
    %c0_9 = arith.constant 0 : index
    %10 = vector.load %arg4[%c0_8, %c0_9] : memref<8x8xbf16, #tpu.memory_space<vmem>>, vector<8x8xbf16>
    %11 = arith.truncf %9 : vector<8x153xf32> to vector<8x153xbf16>
    %cst_10 = arith.constant dense<0.000000e+00> : vector<8x153xf32>
    %12 = tpu.matmul %10, %11, %cst_10 {dimension_numbers = #tpu.dot_dimension_numbers<[1], [0], [0], [1], [0, 0, 1, 1], [], []>} : vector<8x8xbf16>, vector<8x153xbf16>, vector<8x153xf32> -> vector<8x153xf32>
    %c0_11 = arith.constant 0 : index
    %c0_12 = arith.constant 0 : index
    %c0_13 = arith.constant 0 : index
    %13 = vector.load %arg5[%c0_11, %c0_12, %c0_13] : memref<1x8x153xf32, #tpu.memory_space<vmem>>, vector<1x8x153xf32>
    %14 = vector.shape_cast %13 : vector<1x8x153xf32> to vector<8x153xf32>
    %15 = vector.shape_cast %12 : vector<8x153xf32> to vector<1x8x153xf32>
    tpu.vector_store %arg5[%c0_11, %c0_12, %c0_13], %15 {strides = array<i32>} : memref<1x8x153xf32, #tpu.memory_space<vmem>>, vector<1x8x153xf32>,
    return
  }
  func.func @transform_0(%arg0: i32) -> (i32, i32, i32) {
    %c0_i32 = arith.constant 0 : i32
    %c0_i32_0 = arith.constant 0 : i32
    %c0_i32_1 = arith.constant 0 : i32
    return %arg0, %c0_i32, %c0_i32_0 : i32, i32, i32
  }
  func.func @transform_1(%arg0: i32) -> (i32, i32, i32) {
    %c0_i32 = arith.constant 0 : i32
    %c0_i32_0 = arith.constant 0 : i32
    %c0_i32_1 = arith.constant 0 : i32
    return %arg0, %c0_i32, %c0_i32_0 : i32, i32, i32
  }
  func.func @transform_2(%arg0: i32) -> (i32, i32, i32) {
    %c0_i32 = arith.constant 0 : i32
    %c0_i32_0 = arith.constant 0 : i32
    %c0_i32_1 = arith.constant 0 : i32
    return %arg0, %c0_i32, %c0_i32_0 : i32, i32, i32
  }
  func.func @transform_3(%arg0: i32) -> (i32, i32) {
    %c0_i32 = arith.constant 0 : i32
    %c0_i32_0 = arith.constant 0 : i32
    %c0_i32_1 = arith.constant 0 : i32
    return %c0_i32, %c0_i32_0 : i32, i32
  }
  func.func @transform_4(%arg0: i32) -> (i32, i32, i32) {
    %c0_i32 = arith.constant 0 : i32
    %c0_i32_0 = arith.constant 0 : i32
    %c0_i32_1 = arith.constant 0 : i32
    return %arg0, %c0_i32, %c0_i32_0 : i32, i32, i32
  }
}

module attributes {stable_mosaic.version = 11 : i64} {
  func.func @_final_kernel(%arg0: i32, %arg1: i32, %arg2: memref<1x8x64xf32, #tpu.memory_space<vmem>>, %arg3: memref<8x8xbf16, #tpu.memory_space<vmem>>, %arg4: memref<8x1xf32, #tpu.memory_space<vmem>>, %arg5: memref<1x8xbf16, #tpu.memory_space<vmem>>, %arg6: memref<1x1xf32, #tpu.memory_space<vmem>>, %arg7: memref<1x1x64xf32, #tpu.memory_space<vmem>>) attributes {dimension_semantics = [#tpu.dimension_semantics<parallel>, #tpu.dimension_semantics<parallel>], iteration_bounds = array<i64: 2, 1>, scalar_prefetch = 0 : i64, scratch_operands = 0 : i64, tpu.core_type = #tpu.core_type<tc>, window_params = [{transform_indices = @transform_0, window_bounds = array<i64: 1, 8, 64>}, {pipeline_mode = #tpu.pipeline_mode<synchronous>, transform_indices = @transform_1, window_bounds = array<i64: 8, 8>}, {pipeline_mode = #tpu.pipeline_mode<synchronous>, transform_indices = @transform_2, window_bounds = array<i64: 8, 1>}, {pipeline_mode = #tpu.pipeline_mode<synchronous>, transform_indices = @transform_3, window_bounds = array<i64: 1, 8>}, {pipeline_mode = #tpu.pipeline_mode<synchronous>, transform_indices = @transform_4, window_bounds = array<i64: 1, 1>}, {transform_indices = @transform_5, window_bounds = array<i64: 1, 1, 64>}]} {
    %c0 = arith.constant 0 : index
    %c0_0 = arith.constant 0 : index
    %0 = vector.load %arg3[%c0, %c0_0] : memref<8x8xbf16, #tpu.memory_space<vmem>>, vector<8x8xbf16>
    %c0_1 = arith.constant 0 : index
    %c0_2 = arith.constant 0 : index
    %c0_3 = arith.constant 0 : index
    %1 = vector.load %arg2[%c0_1, %c0_2, %c0_3] : memref<1x8x64xf32, #tpu.memory_space<vmem>>, vector<1x8x64xf32>
    %2 = vector.shape_cast %1 : vector<1x8x64xf32> to vector<8x64xf32>
    %3 = arith.truncf %2 : vector<8x64xf32> to vector<8x64xbf16>
    %cst = arith.constant dense<0.000000e+00> : vector<8x64xf32>
    %4 = tpu.matmul %0, %3, %cst {dimension_numbers = #tpu.dot_dimension_numbers<[1], [0], [0], [1], [0, 0, 1, 1], [], []>} : vector<8x8xbf16>, vector<8x64xbf16>, vector<8x64xf32> -> vector<8x64xf32>
    %c0_4 = arith.constant 0 : index
    %c0_5 = arith.constant 0 : index
    %5 = vector.load %arg4[%c0_4, %c0_5] : memref<8x1xf32, #tpu.memory_space<vmem>>, vector<8x1xf32>
    %6 = vector.broadcast %5 : vector<8x1xf32> to vector<8x64xf32>
    %7 = arith.addf %4, %6 : vector<8x64xf32>
    %8 = arith.negf %7 : vector<8x64xf32>
    %9 = math.exp %8 : vector<8x64xf32>
    %cst_6 = arith.constant 1.000000e+00 : f32
    %10 = vector.broadcast %cst_6 : f32 to vector<8x64xf32>
    %11 = arith.addf %10, %9 : vector<8x64xf32>
    %12 = arith.divf %10, %11 : vector<8x64xf32>
    %13 = arith.mulf %7, %12 : vector<8x64xf32>
    %c0_7 = arith.constant 0 : index
    %c0_8 = arith.constant 0 : index
    %14 = vector.load %arg5[%c0_7, %c0_8] : memref<1x8xbf16, #tpu.memory_space<vmem>>, vector<1x8xbf16>
    %15 = arith.truncf %13 : vector<8x64xf32> to vector<8x64xbf16>
    %cst_9 = arith.constant dense<0.000000e+00> : vector<1x64xf32>
    %16 = tpu.matmul %14, %15, %cst_9 {dimension_numbers = #tpu.dot_dimension_numbers<[1], [0], [0], [1], [0, 0, 1, 1], [], []>} : vector<1x8xbf16>, vector<8x64xbf16>, vector<1x64xf32> -> vector<1x64xf32>
    %c0_10 = arith.constant 0 : index
    %c0_11 = arith.constant 0 : index
    %17 = vector.load %arg6[%c0_10, %c0_11] : memref<1x1xf32, #tpu.memory_space<vmem>>, vector<1x1xf32>
    %18 = vector.broadcast %17 : vector<1x1xf32> to vector<1x64xf32>
    %19 = arith.addf %16, %18 : vector<1x64xf32>
    %c0_12 = arith.constant 0 : index
    %c0_13 = arith.constant 0 : index
    %c0_14 = arith.constant 0 : index
    %20 = vector.load %arg7[%c0_12, %c0_13, %c0_14] : memref<1x1x64xf32, #tpu.memory_space<vmem>>, vector<1x1x64xf32>
    %21 = vector.shape_cast %20 : vector<1x1x64xf32> to vector<1x64xf32>
    %22 = vector.shape_cast %19 : vector<1x64xf32> to vector<1x1x64xf32>
    tpu.vector_store %arg7[%c0_12, %c0_13, %c0_14], %22 {strides = array<i32>} : memref<1x1x64xf32, #tpu.memory_space<vmem>>, vector<1x1x64xf32>,
    return
  }
  func.func @transform_0(%arg0: i32, %arg1: i32) -> (i32, i32, i32) {
    %c0_i32 = arith.constant 0 : i32
    %c0_i32_0 = arith.constant 0 : i32
    return %arg0, %c0_i32, %arg1 : i32, i32, i32
  }
  func.func @transform_1(%arg0: i32, %arg1: i32) -> (i32, i32) {
    %c0_i32 = arith.constant 0 : i32
    %c0_i32_0 = arith.constant 0 : i32
    %c0_i32_1 = arith.constant 0 : i32
    return %c0_i32, %c0_i32_0 : i32, i32
  }
  func.func @transform_2(%arg0: i32, %arg1: i32) -> (i32, i32) {
    %c0_i32 = arith.constant 0 : i32
    %c0_i32_0 = arith.constant 0 : i32
    %c0_i32_1 = arith.constant 0 : i32
    return %c0_i32, %c0_i32_0 : i32, i32
  }
  func.func @transform_3(%arg0: i32, %arg1: i32) -> (i32, i32) {
    %c0_i32 = arith.constant 0 : i32
    %c0_i32_0 = arith.constant 0 : i32
    %c0_i32_1 = arith.constant 0 : i32
    return %c0_i32, %c0_i32_0 : i32, i32
  }
  func.func @transform_4(%arg0: i32, %arg1: i32) -> (i32, i32) {
    %c0_i32 = arith.constant 0 : i32
    %c0_i32_0 = arith.constant 0 : i32
    %c0_i32_1 = arith.constant 0 : i32
    return %c0_i32, %c0_i32_0 : i32, i32
  }
  func.func @transform_5(%arg0: i32, %arg1: i32) -> (i32, i32, i32) {
    %c0_i32 = arith.constant 0 : i32
    %c0_i32_0 = arith.constant 0 : i32
    return %arg0, %c0_i32, %arg1 : i32, i32, i32
  }
}

module attributes {stable_mosaic.version = 11 : i64} {
  func.func @_layer_post_kernel(%arg0: i32, %arg1: i32, %arg2: memref<1x8x64xf32, #tpu.memory_space<vmem>>, %arg3: memref<1x8x64xf32, #tpu.memory_space<vmem>>, %arg4: memref<1x4x64xf32, #tpu.memory_space<vmem>>, %arg5: memref<1x4x64xf32, #tpu.memory_space<vmem>>, %arg6: memref<1x8x64xf32, #tpu.memory_space<vmem>>, %arg7: memref<1x8x64xf32, #tpu.memory_space<vmem>>, %arg8: memref<8x4xbf16, #tpu.memory_space<vmem>>, %arg9: memref<16x8xbf16, #tpu.memory_space<vmem>>, %arg10: memref<16x1xf32, #tpu.memory_space<vmem>>, %arg11: memref<1x8x64xf32, #tpu.memory_space<vmem>>, %arg12: memref<1x8x64xf32, #tpu.memory_space<vmem>>) attributes {dimension_semantics = [#tpu.dimension_semantics<parallel>, #tpu.dimension_semantics<parallel>], iteration_bounds = array<i64: 2, 1>, scalar_prefetch = 0 : i64, scratch_operands = 0 : i64, tpu.core_type = #tpu.core_type<tc>, window_params = [{transform_indices = @transform_0, window_bounds = array<i64: 1, 8, 64>}, {transform_indices = @transform_1, window_bounds = array<i64: 1, 8, 64>}, {transform_indices = @transform_2, window_bounds = array<i64: 1, 4, 64>}, {transform_indices = @transform_3, window_bounds = array<i64: 1, 4, 64>}, {transform_indices = @transform_4, window_bounds = array<i64: 1, 8, 64>}, {transform_indices = @transform_5, window_bounds = array<i64: 1, 8, 64>}, {pipeline_mode = #tpu.pipeline_mode<synchronous>, transform_indices = @transform_6, window_bounds = array<i64: 8, 4>}, {pipeline_mode = #tpu.pipeline_mode<synchronous>, transform_indices = @transform_7, window_bounds = array<i64: 16, 8>}, {pipeline_mode = #tpu.pipeline_mode<synchronous>, transform_indices = @transform_8, window_bounds = array<i64: 16, 1>}, {transform_indices = @transform_9, window_bounds = array<i64: 1, 8, 64>}, {transform_indices = @transform_10, window_bounds = array<i64: 1, 8, 64>}]} {
    %c0 = arith.constant 0 : index
    %c0_0 = arith.constant 0 : index
    %c0_1 = arith.constant 0 : index
    %0 = vector.load %arg4[%c0, %c0_0, %c0_1] : memref<1x4x64xf32, #tpu.memory_space<vmem>>, vector<1x4x64xf32>
    %1 = vector.shape_cast %0 : vector<1x4x64xf32> to vector<4x64xf32>
    %c0_2 = arith.constant 0 : index
    %c0_3 = arith.constant 0 : index
    %c0_4 = arith.constant 0 : index
    %2 = vector.load %arg5[%c0_2, %c0_3, %c0_4] : memref<1x4x64xf32, #tpu.memory_space<vmem>>, vector<1x4x64xf32>
    %3 = vector.shape_cast %2 : vector<1x4x64xf32> to vector<4x64xf32>
    %4 = arith.addf %1, %3 : vector<4x64xf32>
    %5 = arith.truncf %4 : vector<4x64xf32> to vector<4x64xbf16>
    %c0_5 = arith.constant 0 : index
    %c0_6 = arith.constant 0 : index
    %6 = vector.load %arg8[%c0_5, %c0_6] : memref<8x4xbf16, #tpu.memory_space<vmem>>, vector<8x4xbf16>
    %cst = arith.constant dense<0.000000e+00> : vector<8x64xf32>
    %7 = tpu.matmul %6, %5, %cst {dimension_numbers = #tpu.dot_dimension_numbers<[1], [0], [0], [1], [0, 0, 1, 1], [], []>} : vector<8x4xbf16>, vector<4x64xbf16>, vector<8x64xf32> -> vector<8x64xf32>
    %c0_7 = arith.constant 0 : index
    %c0_8 = arith.constant 0 : index
    %c0_9 = arith.constant 0 : index
    %8 = vector.load %arg6[%c0_7, %c0_8, %c0_9] : memref<1x8x64xf32, #tpu.memory_space<vmem>>, vector<1x8x64xf32>
    %9 = vector.shape_cast %8 : vector<1x8x64xf32> to vector<8x64xf32>
    %10 = arith.addf %9, %7 : vector<8x64xf32>
    %c0_10 = arith.constant 0 : index
    %c0_11 = arith.constant 0 : index
    %c0_12 = arith.constant 0 : index
    %11 = vector.load %arg7[%c0_10, %c0_11, %c0_12] : memref<1x8x64xf32, #tpu.memory_space<vmem>>, vector<1x8x64xf32>
    %12 = vector.shape_cast %11 : vector<1x8x64xf32> to vector<8x64xf32>
    %13 = vector.extract_strided_slice %12 {offsets = [0, 0], sizes = [4, 64], strides = [1, 1]} : vector<8x64xf32> to vector<4x64xf32>
    %14 = vector.extract_strided_slice %10 {offsets = [0, 0], sizes = [4, 64], strides = [1, 1]} : vector<8x64xf32> to vector<4x64xf32>
    %15 = tpu.concatenate %13, %14 in 0 : vector<4x64xf32>, vector<4x64xf32> -> vector<8x64xf32>
    %16 = vector.extract_strided_slice %12 {offsets = [4, 0], sizes = [4, 64], strides = [1, 1]} : vector<8x64xf32> to vector<4x64xf32>
    %17 = vector.extract_strided_slice %10 {offsets = [4, 0], sizes = [4, 64], strides = [1, 1]} : vector<8x64xf32> to vector<4x64xf32>
    %18 = tpu.concatenate %16, %17 in 0 : vector<4x64xf32>, vector<4x64xf32> -> vector<8x64xf32>
    %19 = arith.negf %15 : vector<8x64xf32>
    %20 = math.exp %19 : vector<8x64xf32>
    %cst_13 = arith.constant 1.000000e+00 : f32
    %21 = vector.broadcast %cst_13 : f32 to vector<8x64xf32>
    %22 = arith.addf %21, %20 : vector<8x64xf32>
    %23 = arith.divf %21, %22 : vector<8x64xf32>
    %24 = math.tanh %18 : vector<8x64xf32>
    %25 = arith.mulf %23, %24 : vector<8x64xf32>
    %c0_14 = arith.constant 0 : index
    %c0_15 = arith.constant 0 : index
    %26 = vector.load %arg9[%c0_14, %c0_15] : memref<16x8xbf16, #tpu.memory_space<vmem>>, vector<16x8xbf16>
    %27 = arith.truncf %25 : vector<8x64xf32> to vector<8x64xbf16>
    %cst_16 = arith.constant dense<0.000000e+00> : vector<16x64xf32>
    %28 = tpu.matmul %26, %27, %cst_16 {dimension_numbers = #tpu.dot_dimension_numbers<[1], [0], [0], [1], [0, 0, 1, 1], [], []>} : vector<16x8xbf16>, vector<8x64xbf16>, vector<16x64xf32> -> vector<16x64xf32>
    %c0_17 = arith.constant 0 : index
    %c0_18 = arith.constant 0 : index
    %29 = vector.load %arg10[%c0_17, %c0_18] : memref<16x1xf32, #tpu.memory_space<vmem>>, vector<16x1xf32>
    %30 = vector.broadcast %29 : vector<16x1xf32> to vector<16x64xf32>
    %31 = arith.addf %28, %30 : vector<16x64xf32>
    %c0_19 = arith.constant 0 : index
    %c0_20 = arith.constant 0 : index
    %c0_21 = arith.constant 0 : index
    %32 = vector.load %arg2[%c0_19, %c0_20, %c0_21] : memref<1x8x64xf32, #tpu.memory_space<vmem>>, vector<1x8x64xf32>
    %33 = vector.shape_cast %32 : vector<1x8x64xf32> to vector<8x64xf32>
    %34 = vector.extract_strided_slice %31 {offsets = [0, 0], sizes = [8, 64], strides = [1, 1]} : vector<16x64xf32> to vector<8x64xf32>
    %35 = arith.addf %33, %34 : vector<8x64xf32>
    %cst_22 = arith.constant 0.707106769 : f32
    %36 = vector.broadcast %cst_22 : f32 to vector<8x64xf32>
    %37 = arith.mulf %35, %36 : vector<8x64xf32>
    %c0_23 = arith.constant 0 : index
    %c0_24 = arith.constant 0 : index
    %c0_25 = arith.constant 0 : index
    %38 = vector.load %arg11[%c0_23, %c0_24, %c0_25] : memref<1x8x64xf32, #tpu.memory_space<vmem>>, vector<1x8x64xf32>
    %39 = vector.shape_cast %38 : vector<1x8x64xf32> to vector<8x64xf32>
    %40 = vector.shape_cast %37 : vector<8x64xf32> to vector<1x8x64xf32>
    tpu.vector_store %arg11[%c0_23, %c0_24, %c0_25], %40 {strides = array<i32>} : memref<1x8x64xf32, #tpu.memory_space<vmem>>, vector<1x8x64xf32>,
    %c0_26 = arith.constant 0 : index
    %c0_27 = arith.constant 0 : index
    %c0_28 = arith.constant 0 : index
    %41 = vector.load %arg3[%c0_26, %c0_27, %c0_28] : memref<1x8x64xf32, #tpu.memory_space<vmem>>, vector<1x8x64xf32>
    %42 = vector.shape_cast %41 : vector<1x8x64xf32> to vector<8x64xf32>
    %43 = vector.extract_strided_slice %31 {offsets = [8, 0], sizes = [8, 64], strides = [1, 1]} : vector<16x64xf32> to vector<8x64xf32>
    %44 = arith.addf %42, %43 : vector<8x64xf32>
    %c0_29 = arith.constant 0 : index
    %c0_30 = arith.constant 0 : index
    %c0_31 = arith.constant 0 : index
    %45 = vector.load %arg12[%c0_29, %c0_30, %c0_31] : memref<1x8x64xf32, #tpu.memory_space<vmem>>, vector<1x8x64xf32>
    %46 = vector.shape_cast %45 : vector<1x8x64xf32> to vector<8x64xf32>
    %47 = vector.shape_cast %44 : vector<8x64xf32> to vector<1x8x64xf32>
    tpu.vector_store %arg12[%c0_29, %c0_30, %c0_31], %47 {strides = array<i32>} : memref<1x8x64xf32, #tpu.memory_space<vmem>>, vector<1x8x64xf32>,
    return
  }
  func.func @transform_0(%arg0: i32, %arg1: i32) -> (i32, i32, i32) {
    %c0_i32 = arith.constant 0 : i32
    %c0_i32_0 = arith.constant 0 : i32
    return %arg0, %c0_i32, %arg1 : i32, i32, i32
  }
  func.func @transform_1(%arg0: i32, %arg1: i32) -> (i32, i32, i32) {
    %c0_i32 = arith.constant 0 : i32
    %c0_i32_0 = arith.constant 0 : i32
    return %arg0, %c0_i32, %arg1 : i32, i32, i32
  }
  func.func @transform_2(%arg0: i32, %arg1: i32) -> (i32, i32, i32) {
    %c0_i32 = arith.constant 0 : i32
    %c0_i32_0 = arith.constant 0 : i32
    return %arg0, %c0_i32, %arg1 : i32, i32, i32
  }
  func.func @transform_3(%arg0: i32, %arg1: i32) -> (i32, i32, i32) {
    %c0_i32 = arith.constant 0 : i32
    %c0_i32_0 = arith.constant 0 : i32
    return %arg0, %c0_i32, %arg1 : i32, i32, i32
  }
  func.func @transform_4(%arg0: i32, %arg1: i32) -> (i32, i32, i32) {
    %c0_i32 = arith.constant 0 : i32
    %c0_i32_0 = arith.constant 0 : i32
    return %arg0, %c0_i32, %arg1 : i32, i32, i32
  }
  func.func @transform_5(%arg0: i32, %arg1: i32) -> (i32, i32, i32) {
    %c0_i32 = arith.constant 0 : i32
    %c0_i32_0 = arith.constant 0 : i32
    return %arg0, %c0_i32, %arg1 : i32, i32, i32
  }
  func.func @transform_6(%arg0: i32, %arg1: i32) -> (i32, i32) {
    %c0_i32 = arith.constant 0 : i32
    %c0_i32_0 = arith.constant 0 : i32
    %c0_i32_1 = arith.constant 0 : i32
    return %c0_i32, %c0_i32_0 : i32, i32
  }
  func.func @transform_7(%arg0: i32, %arg1: i32) -> (i32, i32) {
    %c0_i32 = arith.constant 0 : i32
    %c0_i32_0 = arith.constant 0 : i32
    %c0_i32_1 = arith.constant 0 : i32
    return %c0_i32, %c0_i32_0 : i32, i32
  }
  func.func @transform_8(%arg0: i32, %arg1: i32) -> (i32, i32) {
    %c0_i32 = arith.constant 0 : i32
    %c0_i32_0 = arith.constant 0 : i32
    %c0_i32_1 = arith.constant 0 : i32
    return %c0_i32, %c0_i32_0 : i32, i32
  }
  func.func @transform_9(%arg0: i32, %arg1: i32) -> (i32, i32, i32) {
    %c0_i32 = arith.constant 0 : i32
    %c0_i32_0 = arith.constant 0 : i32
    return %arg0, %c0_i32, %arg1 : i32, i32, i32
  }
  func.func @transform_10(%arg0: i32, %arg1: i32) -> (i32, i32, i32) {
    %c0_i32 = arith.constant 0 : i32
    %c0_i32_0 = arith.constant 0 : i32
    return %arg0, %c0_i32, %arg1 : i32, i32, i32
  }
}

</mosaic_0001>

<bundles_post_ra>
// kernel: _lambda_.9
= control target key start
LH: loop header
LB: loop body
LE: loop exit
PB: predicated region body
PF: predicated region fallthrough
CT: control target
= control target key end

     0   :  { %s882_s24 = smov 0   ;;  %s884_s25 = smov 0   ;;  %s948_s0 = inlined_call_operand.vmem [shape: f32[2,1,8,66], index: 0, kind: input, shape index: {}]   ;;  %s949_s1 = inlined_call_operand.vmem [shape: f32[2,8,1], index: 1, kind: input, shape index: {}]   ;;  %s950_s2 = inlined_call_operand.vmem [shape: bf16[16,12], index: 2, kind: input, shape index: {}]   ;;  %s951_s3 = inlined_call_operand.vmem [shape: bf16[8,12], index: 3, kind: input, shape index: {}]   ;;  %s952_s4 = inlined_call_operand.vmem [shape: bf16[4,4], index: 4, kind: input, shape index: {}]   ;;  %s953_s5 = inlined_call_operand.vmem [shape: f32[2,8,64], index: 5, kind: output, shape index: {0}]   ;;  %s954_s6 = inlined_call_operand.vmem [shape: f32[2,8,64], index: 6, kind: output, shape index: {1}]   ;;  %s955_s7 = inlined_call_operand.vmem [shape: f32[2,4,64], index: 7, kind: output, shape index: {2}]  }
   0x1   :  { %s886_s26 = smov 0  }
   0x2 LB: > { %s30_s27 = sadd.s32 1, %s831_s25  ;;  %p740_p0 = scmp.ge.s32.totalorder %s835_s26, 1  ;;  %s835_s26 = sphi %s886_s26, %s18_s26   ;;  %s831_s25 = sphi %s884_s25, %s957_s25   ;;  %s827_s24 = sphi %s882_s24, %s956_s24  }
   0x3   : > { %p32_p1 = scmp.ge.s32.totalorder %s30_s27, 2  ;;  %p273_p2 = scmp.lt.s32.totalorder %s835_s26, 3 }
   0x5   : > { %s959_s27 = smov (%p32_p1, %s30_s27), 0  ;;  %p274_p3 = pnand %p740_p0, %p273_p2 }
   0x6   : > { %p327_p4 = scmp.lt.s32.totalorder (!%p274_p3), %s827_s24, 1  ;;  %v837_v0 = vmov (!%p274_p3), 0   ;;  %v361_v2 = vlaneseq (!%p274_p3)  ;;  %v838_v5 = vmov (!%p274_p3), 0.0   ;;  %vm839_vm2 = vmmov (!%p274_p3), 0   ;;  %s840_s12 = smov (!%p274_p3), 126   ;;  %v808_v20 = vld [vmem:[%s950_s2] sm:$0xff] (!%p274_p3)  }
   0x7   : > { %277 = sbr.rel (%p274_p3) target bundleno = 522 (0x20a), region = 40  ;;  %807 = vset.pattern.permute.xlu0 (!%p274_p3), %v837_v0  ;;  %760 = vmatprep.subr.bf16.mxu0 (!%p274_p3), %v838_v5  ;;  %s841_s13 = smov (!%p274_p3), 127   ;;  %vm388_vm4 = vcmask (!%p274_p3), 1043456   ;;  %vm400_vm5 = vcmask (!%p274_p3), 1045504   ;;  %vm515_vm6 = vcmask (!%p274_p3), 1041408   ;;  %vm396_vm7 = vcmask (!%p274_p3), 97280  }
   0x8   : > { %v362_v3 = vand.u32 (!%p274_p3), 127, %v361_v2  ;;  %766 = vmatprep.subr.bf16.mxu1 (!%p274_p3), %v838_v5  ;;  %762 = vmatprep.mubr.msk.bf16.mxu0 (!%p274_p3), %vm839_vm2, %v838_v5  ;;  %v445_v26 = vld [vmem:[%s951_s3] sm:$0xf] (!%p274_p3)  ;;  %vm511_vm8 = vcmask (!%p274_p3), 31744   ;;  %vm502_vm9 = vcmask (!%p274_p3), 523264   ;;  %vm566_vm10 = vcmask (!%p274_p3), 519168  }
   0x9   : > { %768 = vmatprep.mubr.msk.bf16.mxu1 (!%p274_p3), %vm839_vm2, %v838_v5  ;;  %v505_v27 = vld [vmem:[%s952_s4] sm:$0x3] (!%p274_p3) }
   0xa   : > { %v746_v4 = vadd.s32 (!%p274_p3), 4294967295, %v362_v3 }
   0xc   : > { %vm367_vm0 = vcmp.ge.s32.totalorder (!%p274_p3), %v746_v4, 0  ;;  %vm368_vm1 = vcmp.lt.s32.totalorder (!%p274_p3), %v746_v4, 64 }
   0xd   : > { %vm369_vm3 = vmand (!%p274_p3), %vm367_vm0, %vm368_vm1 }
   0xe   : > { %s961_s24 = smov (!%p327_p4, %s827_s24), 1 }
   0xf   : > { %s903_s28 = sshll.u32 %s961_s24, 3 }
  0x10   : > { %s337_s8 = scalar_lea.vmem %s949_s1, %s903_s28  ;;  %s333_s11 = scalar_lea.vmem %s948_s0, %s903_s28 }
  0x11   : > { %v370_v1 = vld [vmem:[%s337_s8] sm:$0xff]  ;;  %s351_s22 = scalar_lea.vmem %s954_s6, %s903_s28  ;;  %s344_s30 = scalar_lea.vmem %s953_s5, %s903_s28 }
  0x12   : > { %373 = vperm.xlu0 %807, %v370_v1   ;;  %v360_v6 = vld [vmem:[%s333_s11] sm:$0xff]  ;;  %s745_s8 = sshll.u32 %s961_s24, 2 }
  0x13   : > { %s358_s10 = scalar_lea.vmem %s955_s7, %s745_s8 }
  0x91   : > { %v374_v7 = vpop.permute.xlu0 %373 }
  0x92   : > { %v376_v8 = vadd.f32 %v374_v7, %v360_v6 }
  0x94   : > { %v377_v9 = vsel %vm369_vm3, %v376_v8, 0.0 }
  0x95   : > { %385 = vrot.lane.b32.xlu1 %v377_v9, %s840_s12  ;;  %v381_v10 = vrot.slane %v377_v9, 4  ;;  %v506_v11 = vpack.c.bf16 %v377_v9, %v377_v9 }
  0x97   : > { %382 = vrot.lane.b32.xlu0 %v381_v10, %s841_s13  ;;  %v508_v12 = vrot.slane %v506_v11, 2 }
  0x99   : > { %509 = vrot.lane.b32.xlu1 %v508_v12, %s841_s13 }
  0x9b   : > { %447 = vrot.lane.b32.xlu0 %v377_v9, %s841_s13 }
  0x9d   : > { %450 = vrot.lane.b32.xlu1 %v381_v10, %s840_s12 }
 0x107   : > { %v386_v13 = vpop.permute.xlu1 %385 }
 0x109   : > { %v383_v14 = vpop.permute.xlu0 %382 }
 0x10a   : > { %v389_v15 = vsel %vm388_vm4, %v377_v9, %v383_v14 }
 0x10b   : > { %v510_v16 = vpop.permute.xlu1 %509  ;;  %v390_v17 = vpack.c.bf16 %v386_v13, %v389_v15 }
 0x10c   : > { %v517_v24 = vsel %vm515_vm6, %v510_v16, 0 }
 0x10d   : > { %v448_v18 = vpop.permute.xlu0 %447  ;;  %v402_v19 = vsel %vm400_vm5, %v390_v17, 0 }
 0x10e   : > { %761 = vmatpush3.bf16.msra.mxu0 %v402_v19  ;;  %v453_v21 = vsel %vm388_vm4, %v381_v10, %v448_v18 }
 0x10f   : > { %v451_v22 = vpop.permute.xlu1 %450  ;;  %772 = vmatprep.subr.bf16.mxu0 %v838_v5 }
 0x110   : > { %v454_v23 = vpack.c.bf16 %v451_v22, %v453_v21 }
 0x111   : > { %763 = vmatmul.mubr.msk.bf16.vlgmr.msra.gmra.mrb[0].mxu0 %vm396_vm7, %v808_v20 }
 0x112   : > { %773 = vmatpush3.bf16.msra.mxu0 %v517_v24  ;;  %v459_v25 = vsel %vm400_vm5, %v454_v23, 0  ;;  %774 = vmatprep.mubr.msk.bf16.mxu0 %vm839_vm2, %v838_v5 }
 0x113   : > { %767 = vmatpush3.bf16.msra.mxu1 %v459_v25 }
 0x116   : > { %769 = vmatmul.mubr.msk.bf16.vlgmr.msra.gmra.mrb[0].mxu1 %vm396_vm7, %v445_v26 }
 0x119   : > { %775 = vmatmul.mubr.msk.bf16.vlgmr.msra.gmra.mrb[4].mxu0 %vm511_vm8, %v505_v27 }
 0x1e4   : > { %v438_v28 = vpop.f32.mrb[0].mxu0 }
 0x1e5   : > { %v764_v29 = vpop.f32.mrb[1].mxu0 }
 0x1e6   : > { %v441_v30 = vpop.f32.mrb[2].mxu0 }
 0x1e7   : > { %504 = vst.msk [vmem:[%s351_s22] sm:$0xff] %vm502_vm9, %v441_v30  ;;  %v765_v31 = vpop.f32.mrb[3].mxu0 }
 0x1e9   : > { %v495_v32 = vpop.f32.mrb[0].mxu1 }
 0x1ea   : > { %v501_v33 = vadd.f32 %v495_v32, %v438_v28  ;;  %v770_v34 = vpop.f32.mrb[1].mxu1 }
 0x1eb   : > { %v498_v35 = vpop.f32.mrb[2].mxu1 }
 0x1ec   : > { %503 = vst.msk [vmem:[%s344_s30] sm:$0xff] %vm502_vm9, %v501_v33  ;;  %v553_v36 = vpop.f32.mrb[4].mxu0  ;;  %v771_v37 = vpop.f32.mrb[3].mxu1 }
 0x1ed   : > { %v751_v38 = vmul.f32 -1.442695, %v553_v36  ;;  %v776_v39 = vpop.f32.mrb[5].mxu0 }
 0x1ee   : > { %v556_v40 = vpop.f32.mrb[6].mxu0 }
 0x1ef   : > { %809 = vpow2.f32 %v751_v38  ;;  %v777_v41 = vpop.f32.mrb[7].mxu0 }
 0x1f9   : > { %v810_v42 = vpop.eup %809 }
 0x1fa   : > { %v562_v43 = vadd.f32 1.0, %v810_v42 }
 0x1fc   : > { %811 = vrcp.f32 %v562_v43 }
 0x206   : > { %v812_v44 = vpop.eup %811 }
 0x207   : > { %v565_v45 = vmul.f32 %v812_v44, %v553_v36 }
 0x209   : > { %567 = vst.msk [vmem:[%s358_s10] sm:$0xf] %vm566_vm10, %v565_v45 }
 0x20a PF: > { %s18_s26 = sadd.s32 1, %s835_s26   ;;  %s956_s24 = smov %s831_s25 }
 0x20b   : > { %p15_p5 = scmp.ge.s32.totalorder %s18_s26, 4   ;;  %s957_s25 = smov %s959_s27 }
 0x20d   :  { %17 = sbr.rel (!%p15_p5) target bundleno = 2 (0x2), region = 97 }

// kernel: _lambda_.8
= control target key start
LH: loop header
LB: loop body
LE: loop exit
PB: predicated region body
PF: predicated region fallthrough
CT: control target
= control target key end

     0   :  { %s436_s12 = smov 0   ;;  %s438_s13 = smov 0   ;;  %s475_s0 = inlined_call_operand.vmem [shape: f32[2,2,64], index: 0, kind: input, shape index: {}]   ;;  %s476_s1 = inlined_call_operand.vmem [shape: bf16[8,2], index: 1, kind: input, shape index: {}]   ;;  %s477_s2 = inlined_call_operand.vmem [shape: f32[8,1], index: 2, kind: input, shape index: {}]   ;;  %s478_s3 = inlined_call_operand.vmem [shape: f32[2,8,64], index: 3, kind: output, shape index: {}]  }
   0x1   :  { %s440_s14 = smov 0  }
   0x2 LB: > { %s25_s15 = sadd.s32 1, %s407_s13  ;;  %p342_p0 = scmp.ge.s32.totalorder %s411_s14, 1  ;;  %s411_s14 = sphi %s440_s14, %s13_s14   ;;  %s407_s13 = sphi %s438_s13, %s480_s13   ;;  %s403_s12 = sphi %s436_s12, %s479_s12  }
   0x3   : > { %p27_p1 = scmp.ge.s32.totalorder %s25_s15, 2  ;;  %p155_p2 = scmp.lt.s32.totalorder %s411_s14, 3 }
   0x5   : > { %s482_s15 = smov (%p27_p1, %s25_s15), 0  ;;  %p156_p3 = pnand %p342_p0, %p155_p2 }
   0x6   : > { %p183_p4 = scmp.lt.s32.totalorder (!%p156_p3), %s403_s12, 1  ;;  %v413_v0 = vmov (!%p156_p3), 0.0   ;;  %vm414_vm0 = vmmov (!%p156_p3), 0   ;;  %v201_v1 = vld [vmem:[%s477_s2] sm:$0xff] (!%p156_p3)  ;;  %v415_v2 = vmov (!%p156_p3), 0   ;;  %vm211_vm1 = vcmask (!%p156_p3), 1040384  }
   0x7   : > { %159 = sbr.rel (%p156_p3) target bundleno = 267 (0x10b), region = 32  ;;  %351 = vmatprep.subr.bf16.mxu0 (!%p156_p3), %v413_v0  ;;  %353 = vmatprep.mubr.msk.bf16.mxu0 (!%p156_p3), %vm414_vm0, %v413_v0  ;;  %v200_v6 = vld [vmem:[%s476_s1] sm:$0xf] (!%p156_p3)  ;;  %vm207_vm2 = vcmask (!%p156_p3), 15360   ;;  %vm262_vm3 = vcmask (!%p156_p3), 523264  }
   0x8   : > { %384 = vset.pattern.permute.xlu0 (!%p156_p3), %v415_v2 }
   0x9   : > { %204 = vperm.xlu0 (!%p156_p3), %384, %v201_v1  }
   0xe   : > { %s484_s12 = smov (!%p183_p4, %s403_s12), 1 }
   0xf   : > { %s343_s18 = sshll.u32 %s484_s12, 1  ;;  %s344_s24 = sshll.u32 %s484_s12, 3 }
  0x10   : > { %s189_s21 = scalar_lea.vmem %s475_s0, %s343_s18  ;;  %s196_s27 = scalar_lea.vmem %s478_s3, %s344_s24 }
  0x11   : > { %v198_v3 = vld [vmem:[%s189_s21] sm:$0x3] }
  0x12   : > { %v199_v4 = vpack.c.bf16 %v198_v3, %v198_v3 }
  0x14   : > { %v213_v5 = vsel %vm211_vm1, %v199_v4, 0 }
  0x15   : > { %352 = vmatpush3.bf16.msra.mxu0 %v213_v5 }
  0x18   : > { %354 = vmatmul.mubr.msk.bf16.vlgmr.msra.gmra.mrb[0].mxu0 %vm207_vm2, %v200_v6 }
  0x88   : > { %v205_v7 = vpop.permute.xlu0 %204 }
  0xeb   : > { %v249_v8 = vpop.f32.mrb[0].mxu0 }
  0xec   : > { %v250_v9 = vadd.f32 %v249_v8, %v205_v7  ;;  %v355_v10 = vpop.f32.mrb[1].mxu0 }
  0xed   : > { %v252_v11 = vpop.f32.mrb[2].mxu0 }
  0xee   : > { %v346_v12 = vmul.f32 -1.442695, %v250_v9  ;;  %v356_v13 = vpop.f32.mrb[3].mxu0 }
  0xf0   : > { %385 = vpow2.f32 %v346_v12 }
  0xfa   : > { %v386_v14 = vpop.eup %385 }
  0xfb   : > { %v258_v15 = vadd.f32 1.0, %v386_v14 }
  0xfd   : > { %387 = vrcp.f32 %v258_v15 }
 0x107   : > { %v388_v16 = vpop.eup %387 }
 0x108   : > { %v261_v17 = vmul.f32 %v388_v16, %v250_v9 }
 0x10a   : > { %263 = vst.msk [vmem:[%s196_s27] sm:$0xff] %vm262_vm3, %v261_v17 }
 0x10b PF: > { %s13_s14 = sadd.s32 1, %s411_s14   ;;  %s479_s12 = smov %s407_s13 }
 0x10c   : > { %p10_p5 = scmp.ge.s32.totalorder %s13_s14, 4   ;;  %s480_s13 = smov %s482_s15 }
 0x10e   :  { %12 = sbr.rel (!%p10_p5) target bundleno = 2 (0x2), region = 62 }

// kernel: reverse.5
= control target key start
LH: loop header
LB: loop body
LE: loop exit
PB: predicated region body
PF: predicated region fallthrough
CT: control target
= control target key end

     0   :  { %v71_v3 = vlaneseq  ;;  %v64_v9 = vld [vmem:[#allocation0 + $0x7] ss:$-1 sm:$0xff]  ;;  %v78_v12 = vld [vmem:[#allocation0 + $0x17] ss:$-1 sm:$0xff]  ;;  %s329_s0 = inlined_call_operand.vmem [shape: f32[8,17,7], index: 0, kind: input, shape index: {}]   ;;  %s330_s1 = inlined_call_operand.vmem [shape: f32[8,17,7], index: 1, kind: output, shape index: {}]  }
   0x1   :  { %v44_v0 = vld [vmem:[%s329_s0] sm:$0xff]  ;;  %v46_v1 = vld [vmem:[%s329_s0 + $0x8] sm:$0xff]  ;;  %v48_v2 = vld [vmem:[%s329_s0 + $0x10] sm:$0xff]  ;;  %v65_v10 = vrot.slane %v64_v9, 1  ;;  %v79_v14 = vrot.slane %v78_v12, 1 }
   0x2   :  { %45 = vst [vmem:[#allocation0 + $0x8] sm:$0xff] %v44_v0  ;;  %47 = vst [vmem:[#allocation0 + $0x18] sm:$0xff] %v46_v1  ;;  %v50_v4 = vld [vmem:[%s329_s0 + $0x18] sm:$0xff]  ;;  %v52_v5 = vld [vmem:[%s329_s0 + $0x20] sm:$0xff]  ;;  %v72_v11 = vshrl.u32 %v71_v3, 7 }
   0x3   :  { %49 = vst [vmem:[#allocation0 + $0x28] sm:$0xff] %v48_v2  ;;  %v54_v6 = vld [vmem:[%s329_s0 + $0x28] sm:$0xff]  ;;  %51 = vst [vmem:[#allocation0 + $0x38] sm:$0xff] %v50_v4  ;;  %v56_v7 = vld [vmem:[%s329_s0 + $0x30] sm:$0xff] }
   0x4   :  { %53 = vst [vmem:[#allocation0 + $0x48] sm:$0xff] %v52_v5  ;;  %55 = vst [vmem:[#allocation0 + $0x58] sm:$0xff] %v54_v6  ;;  %v58_v8 = vld [vmem:[%s329_s0 + $0x38] sm:$0xff]  ;;  %v92_v13 = vld [vmem:[#allocation0 + $0x27] ss:$-1 sm:$0xff]  ;;  %vm73_vm0 = vcmp.lt.s32.totalorder %v72_v11, 7 }
   0x5   :  { %57 = vst [vmem:[#allocation0 + $0x68] sm:$0xff] %v56_v7  ;;  %59 = vst [vmem:[#allocation0 + $0x78] sm:$0xff] %v58_v8  ;;  %v93_v15 = vrot.slane %v92_v13, 1  ;;  %v106_v16 = vld [vmem:[#allocation0 + $0x37] ss:$-1 sm:$0xff] }
   0x6   :  { %66 = vst [vmem:[#allocation1] sm:$0xff] %v65_v10  ;;  %v107_v17 = vrot.slane %v106_v16, 1  ;;  %v120_v18 = vld [vmem:[#allocation0 + $0x47] ss:$-1 sm:$0xff]  ;;  %v134_v19 = vld [vmem:[#allocation0 + $0x57] ss:$-1 sm:$0xff] }
   0x7   :  { %80 = vst [vmem:[#allocation1 + $0x8] sm:$0xff] %v79_v14  ;;  %94 = vst [vmem:[#allocation1 + $0x10] sm:$0xff] %v93_v15  ;;  %v121_v20 = vrot.slane %v120_v18, 1  ;;  %v135_v21 = vrot.slane %v134_v19, 1  ;;  %v148_v22 = vld [vmem:[#allocation0 + $0x67] ss:$-1 sm:$0xff] }
   0x8   :  { %v162_v23 = vld [vmem:[#allocation0 + $0x77] ss:$-1 sm:$0xff]  ;;  %108 = vst [vmem:[#allocation1 + $0x18] sm:$0xff] %v107_v17  ;;  %v149_v24 = vrot.slane %v148_v22, 1 }
   0x9   :  { %v163_v25 = vrot.slane %v162_v23, 1  ;;  %v69_v26 = vld [vmem:[#allocation0 + $0xf] ss:$-1 sm:$0xff]  ;;  %v83_v27 = vld [vmem:[#allocation0 + $0x1f] ss:$-1 sm:$0xff]  ;;  %122 = vst [vmem:[#allocation1 + $0x20] sm:$0xff] %v121_v20 }
   0xa   :  { %v97_v28 = vld [vmem:[#allocation0 + $0x2f] ss:$-1 sm:$0xff]  ;;  %136 = vst [vmem:[#allocation1 + $0x28] sm:$0xff] %v135_v21  ;;  %v70_v29 = vrot.slane %v69_v26, 1  ;;  %v84_v30 = vrot.slane %v83_v27, 1  ;;  %150 = vst [vmem:[#allocation1 + $0x30] sm:$0xff] %v149_v24 }
   0xb   :  { %v98_v31 = vrot.slane %v97_v28, 1  ;;  %v111_v32 = vld [vmem:[#allocation0 + $0x3f] ss:$-1 sm:$0xff]  ;;  %164 = vst [vmem:[#allocation1 + $0x38] sm:$0xff] %v163_v25  ;;  %v125_v34 = vld [vmem:[#allocation0 + $0x4f] ss:$-1 sm:$0xff] }
   0xc   :  { %v112_v33 = vrot.slane %v111_v32, 1  ;;  %v139_v35 = vld [vmem:[#allocation0 + $0x5f] ss:$-1 sm:$0xff]  ;;  %74 = vst.msk [vmem:[#allocation1] sm:$0xff] %vm73_vm0, %v70_v29  ;;  %88 = vst.msk [vmem:[#allocation1 + $0x8] sm:$0xff] %vm73_vm0, %v84_v30  ;;  %v126_v36 = vrot.slane %v125_v34, 1 }
   0xd   :  { %102 = vst.msk [vmem:[#allocation1 + $0x10] sm:$0xff] %vm73_vm0, %v98_v31  ;;  %v140_v37 = vrot.slane %v139_v35, 1  ;;  %v153_v38 = vld [vmem:[#allocation0 + $0x6f] ss:$-1 sm:$0xff]  ;;  %v167_v39 = vld [vmem:[#allocation0 + $0x7f] ss:$-1 sm:$0xff] }
   0xe   :  { %116 = vst.msk [vmem:[#allocation1 + $0x18] sm:$0xff] %vm73_vm0, %v112_v33  ;;  %v154_v40 = vrot.slane %v153_v38, 1  ;;  %v168_v41 = vrot.slane %v167_v39, 1  ;;  %130 = vst.msk [vmem:[#allocation1 + $0x20] sm:$0xff] %vm73_vm0, %v126_v36 }
   0xf   :  { %144 = vst.msk [vmem:[#allocation1 + $0x28] sm:$0xff] %vm73_vm0, %v140_v37 }
  0x10   :  { %158 = vst.msk [vmem:[#allocation1 + $0x30] sm:$0xff] %vm73_vm0, %v154_v40  ;;  %172 = vst.msk [vmem:[#allocation1 + $0x38] sm:$0xff] %vm73_vm0, %v168_v41 }
  0x13   :  { %v214_v42 = vld [vmem:[#allocation1] sm:$0xff]  ;;  %v216_v43 = vld [vmem:[#allocation1 + $0x8] sm:$0xff] }
  0x14   :  { %v218_v44 = vld [vmem:[#allocation1 + $0x10] sm:$0xff]  ;;  %215 = vst [vmem:[%s330_s1] sm:$0xff] %v214_v42  ;;  %217 = vst [vmem:[%s330_s1 + $0x8] sm:$0xff] %v216_v43 }
  0x15   :  { %219 = vst [vmem:[%s330_s1 + $0x10] sm:$0xff] %v218_v44  ;;  %v220_v45 = vld [vmem:[#allocation1 + $0x18] sm:$0xff]  ;;  %v222_v46 = vld [vmem:[#allocation1 + $0x20] sm:$0xff] }
  0x16   :  { %221 = vst [vmem:[%s330_s1 + $0x18] sm:$0xff] %v220_v45  ;;  %v224_v47 = vld [vmem:[#allocation1 + $0x28] sm:$0xff]  ;;  %223 = vst [vmem:[%s330_s1 + $0x20] sm:$0xff] %v222_v46 }
  0x17   :  { %225 = vst [vmem:[%s330_s1 + $0x28] sm:$0xff] %v224_v47  ;;  %v226_v48 = vld [vmem:[#allocation1 + $0x30] sm:$0xff]  ;;  %v228_v49 = vld [vmem:[#allocation1 + $0x38] sm:$0xff] }
  0x18   :  { %227 = vst [vmem:[%s330_s1 + $0x30] sm:$0xff] %v226_v48  ;;  %229 = vst [vmem:[%s330_s1 + $0x38] sm:$0xff] %v228_v49 }

// kernel: _lambda_.10
= control target key start
LH: loop header
LB: loop body
LE: loop exit
PB: predicated region body
PF: predicated region fallthrough
CT: control target
= control target key end

     0   :  { %s452_s15 = smov 0   ;;  %s478_s0 = inlined_call_operand.vmem [shape: f32[2,8,153], index: 0, kind: input, shape index: {}]   ;;  %s479_s1 = inlined_call_operand.vmem [shape: f32[2,8,153], index: 1, kind: input, shape index: {}]   ;;  %s480_s2 = inlined_call_operand.vmem [shape: f32[2,8,153], index: 2, kind: input, shape index: {}]   ;;  %s481_s3 = inlined_call_operand.vmem [shape: bf16[8,8], index: 3, kind: input, shape index: {}]   ;;  %s482_s4 = inlined_call_operand.vmem [shape: f32[2,8,153], index: 4, kind: output, shape index: {}]  }
   0x1 LB: > { %s388_s16 = sadd.s32 4294967295, %s424_s15   ;;  %p392_p0 = scmp.ge.s32.totalorder %s424_s15, 1  ;;  %s424_s15 = sphi %s452_s15, %s14_s15  }
   0x2   : > { %p182_p1 = scmp.lt.s32.totalorder %s424_s15, 3 }
   0x4   : > { %p183_p2 = pnand %p392_p0, %p182_p1 }
   0x5   : > { %p218_p3 = scmp.lt.s32.totalorder (!%p183_p2), %s388_s16, 1  ;;  %v426_v0 = vmov (!%p183_p2), 0   ;;  %vm258_vm0 = vcmask (!%p183_p2), 1043456   ;;  %v251_v16 = vld [vmem:[%s481_s3] sm:$0xf] (!%p183_p2)  ;;  %vm254_vm1 = vcmask (!%p183_p2), 64512  }
   0x6   : > { %186 = sbr.rel (%p183_p2) target bundleno = 245 (0xf5), region = 36  ;;  %297 = vmatprep.mubr.bf16.mxu0 (!%p183_p2), %v426_v0  ;;  %vm307_vm2 = vcmask (!%p183_p2), 203776  }
   0xd   : > { %s484_s16 = smov (!%p218_p3, %s388_s16), 1 }
   0xe   : > { %s405_s17 = sshll.u32 %s484_s16, 4 }
   0xf   : > { %s222_s20 = scalar_lea.vmem %s478_s0, %s405_s17  ;;  %s227_s23 = scalar_lea.vmem %s479_s1, %s405_s17 }
  0x10   : > { %s232_s26 = scalar_lea.vmem %s480_s2, %s405_s17  ;;  %v240_v1 = vld [vmem:[%s222_s20 + $0x8] sm:$0xff]  ;;  %v239_v3 = vld [vmem:[%s222_s20] sm:$0xff]  ;;  %s237_s5 = scalar_lea.vmem %s482_s4, %s405_s17 }
  0x11   : > { %v242_v2 = vld [vmem:[%s227_s23 + $0x8] sm:$0xff]  ;;  %v241_v6 = vld [vmem:[%s227_s23] sm:$0xff] }
  0x12   : > { %v244_v4 = vmul.f32 %v242_v2, %v240_v1  ;;  %v246_v5 = vld [vmem:[%s232_s26 + $0x8] sm:$0xff]  ;;  %v245_v7 = vld [vmem:[%s232_s26] sm:$0xff]  ;;  %v243_v8 = vmul.f32 %v241_v6, %v239_v3 }
  0x14   : > { %v248_v9 = vadd.f32 %v246_v5, %v244_v4  ;;  %v247_v10 = vadd.f32 %v245_v7, %v243_v8 }
  0x16   : > { %v250_v11 = vmax.f32 %v248_v9, 0.0  ;;  %v249_v12 = vmax.f32 %v247_v10, 0.0 }
  0x18   : > { %v253_v13 = vpack.c.bf16 %v250_v11, %v250_v11  ;;  %v252_v14 = vpack.c.bf16 %v249_v12, %v249_v12 }
  0x1a   : > { %401 = vmatprep.subr.msk.bf16.mxu0 %vm258_vm0, %v253_v13  ;;  %v260_v15 = vsel %vm258_vm0, %v252_v14, 0 }
  0x1b   : > { %266 = vmatpush1.bf16.msra.mxu0 %v260_v15 }
  0x1e   : > { %402 = vmatmul.mubr.msk.bf16.vlgmr.msra.gmra.mrb[0].mxu0 %vm254_vm1, %v251_v16 }
  0xf1   : > { %v299_v17 = vpop.f32.mrb[0].mxu0 }
  0xf2   : > { %306 = vst [vmem:[%s237_s5] sm:$0xff] %v299_v17  ;;  %v301_v18 = vpop.f32.mrb[1].mxu0 }
  0xf3   : > { %308 = vst.msk [vmem:[%s237_s5 + $0x8] sm:$0xff] %vm307_vm2, %v301_v18  ;;  %v303_v19 = vpop.f32.mrb[2].mxu0 }
  0xf4   : > { %v304_v20 = vpop.f32.mrb[3].mxu0 }
  0xf5 PF: > { %s14_s15 = sadd.s32 1, %s424_s15  }
  0xf6   : > { %p11_p4 = scmp.ge.s32.totalorder %s14_s15, 4  }
  0xf8   :  { %13 = sbr.rel (!%p11_p4) target bundleno = 1 (0x1), region = 72 }

// kernel: _lambda_.15
= control target key start
LH: loop header
LB: loop body
LE: loop exit
PB: predicated region body
PF: predicated region fallthrough
CT: control target
= control target key end

     0   :  { %s785_s0 = inlined_call_operand.vmem [shape: f32[2,8,64], index: 0, kind: input, shape index: {}]   ;;  %s786_s1 = inlined_call_operand.vmem [shape: bf16[8,8], index: 1, kind: input, shape index: {}]   ;;  %s787_s2 = inlined_call_operand.vmem [shape: f32[8,1], index: 2, kind: input, shape index: {}]   ;;  %s788_s3 = inlined_call_operand.vmem [shape: bf16[1,8], index: 3, kind: input, shape index: {}]   ;;  %s789_s4 = inlined_call_operand.<no memory space> [shape: f32[1,1], index: 4, kind: input, shape index: {}]   ;;  %s790_s5 = inlined_call_operand.hbm [shape: f32[2,1,64], index: 5, kind: output, shape index: {}]  }
   0x1   :  { %v10_v0 = vstv %s789_s4 }
   0x2   :  { %11 = vst [vmem:[#allocation2] sm:$0x1] %v10_v0 }
   0x3   :  { %12 = vsyncpa [#allocation4], 0 }
   0x4   :  { %14 = vsyncpa [#allocation4 + $0x1], 0  ;;  %s660_s20 = smov 0   ;;  %s662_s21 = smov 0  }
   0x5   :  { %s664_s22 = smov 0   ;;  %s666_s23 = smov 0  }
   0x6   :  { %s668_s24 = smov 0   ;;  %s670_s25 = smov 0  }
   0x7 LB: > { %s452_s4 = sadd.s32 4294967295, %s621_s25   ;;  %s453_s26 = sadd.s32 4294967294, %s621_s25   ;;  %s621_s25 = sphi %s670_s25, %s20_s25   ;;  %s617_s24 = sphi %s668_s24, %s797_s24   ;;  %s613_s23 = sphi %s666_s23, %s796_s23   ;;  %s609_s22 = sphi %s664_s22, %s795_s22   ;;  %s605_s21 = sphi %s662_s21, %s794_s21   ;;  %s601_s20 = sphi %s660_s20, %s793_s20  }
   0x8   : > { %s32_s27 = sadd.s32 1, %s617_s24  ;;  %s153_s28 = sadd.s32 1, %s609_s22 }
   0x9   : > { %p34_p0 = scmp.ge.s32.totalorder %s32_s27, 2  ;;  %p163_p1 = scmp.ne.s32.totalorder %s609_s22, %s605_s21 }
   0xa   : > { %p164_p2 = scmp.eq.s32.totalorder %s452_s4, 1  ;;  %p169_p3 = scmp.ne.s32.totalorder %s605_s21, %s601_s20 }
   0xb   : > { %s799_s27 = smov (%p34_p0, %s32_s27), 0  ;;  %p170_p5 = scmp.eq.s32.totalorder %s453_s26, 1 }
   0xc   : > { %p700_p4 = por %p164_p2, %p163_p1  ;;  %s148_s30 = ssub.s32 %s617_s24, %s799_s27 }
   0xd   : > { %p456_p6 = scmp.ge.s32.totalorder %s621_s25, 1  ;;  %p151_p7 = scmp.eq.s32.totalorder %s148_s30, 0 }
   0xe   : > { %p707_p8 = por %p170_p5, %p169_p3  ;;  %p210_p9 = scmp.lt.s32.totalorder %s621_s25, 3 }
   0xf   : > { %s713_s7 = scalar_select %p151_p7, %s609_s22, %s153_s28  }
  0x10   : > { %p211_p10 = pnand %p456_p6, %p210_p9 }
  0x11   : > { %p239_p11 = scmp.lt.s32.totalorder (!%p211_p10), %s613_s23, 1  ;;  %v623_v1 = vmov (!%p211_p10), 0.0   ;;  %vm624_vm0 = vmmov (!%p211_p10), 0   ;;  %v250_v2 = vld [vmem:[%s787_s2] sm:$0xff] (!%p211_p10)  ;;  %v625_v3 = vmov (!%p211_p10), 0   ;;  %vm260_vm1 = vcmask (!%p211_p10), 1043456  }
  0x12   : > { %214 = sbr.rel (%p211_p10) target bundleno = 512 (0x200), region = 40  ;;  %468 = vmatprep.subr.bf16.mxu0 (!%p211_p10), %v623_v1  ;;  %470 = vmatprep.mubr.msk.bf16.mxu0 (!%p211_p10), %vm624_vm0, %v623_v1  ;;  %v313_v4 = vld [vmem:[#allocation2] sm:$0x1] (!%p211_p10)  ;;  %v247_v8 = vld [vmem:[%s786_s1] sm:$0xf] (!%p211_p10)  ;;  %vm256_vm2 = vcmask (!%p211_p10), 64512   ;;  %v319_v23 = vlaneseq (!%p211_p10) }
  0x13   : > { %538 = vset.pattern.permute.xlu0 (!%p211_p10), %v625_v3  ;;  %474 = vmatprep.subr.bf16.mxu1 (!%p211_p10), %v623_v1  ;;  %v311_v22 = vld [vmem:[%s788_s3] sm:$0x1] (!%p211_p10)  ;;  %s237_s19 = sand.u32 (!%p211_p10), 1, %s605_s21   ;;  %s461_s4 = sshll.u32 (!%p211_p10), %s613_s23, 4  ;;  %vm369_vm3 = vcmask (!%p211_p10), 516096  }
  0x14   : > { %253 = vperm.xlu0 (!%p211_p10), %538, %v250_v2   ;;  %476 = vmatprep.mubr.msk.bf16.mxu1 (!%p211_p10), %vm624_vm0, %v623_v1  ;;  %v320_v24 = vshrl.u32 (!%p211_p10), %v319_v23, 7  ;;  %s238_s26 = scalar_lea.vmem (!%p211_p10), [#allocation3], %s237_s19  ;;  %s738_s9 = scalar_lea.hbm (!%p211_p10), %s790_s5, %s461_s4 }
  0x15   : > { %s385_s28 = sshll.u32 (!%p211_p10), %s238_s26, 4  ;;  %s740_s28 = int_to_ptr.vmem [resolvable:$true] %s385_s28 }
  0x16   : > { %v321_v25 = vsub.s32 (!%p211_p10), 0, %v320_v24 }
  0x18   : > { %316 = vperm.xlu0 (!%p211_p10), %538, %v313_v4  }
  0x19   : > { %s240_s10 = scalar_select %p239_p11, %s613_s23, 1 }
  0x1a   : > { %s372_s23 = scalar_lea.sflag [#allocation4], %s237_s19 }
  0x1b   : > { %s457_s11 = sshll.u32 %s240_s10, 3  ;;  %s543_s10 = scalar_lea.vmem %s740_s28, 16 }
  0x1c   : > { %s245_s14 = scalar_lea.vmem %s785_s0, %s457_s11  ;;  %p544_p12 = scmp.ne.s32.totalorder %s740_s28, %s543_s10 }
  0x1d   : > { %v248_v5 = vld [vmem:[%s245_s14] sm:$0xff]  ;;  %s626_s11 = smov [#allocation3]  }
  0x1e   : > { %v249_v6 = vpack.c.bf16 %v248_v5, %v248_v5  ;;  %p545_p13 = pnand %p544_p12, %p700_p4  ;;  %s547_s12 = sshll.u32 %s626_s11, 4  ;;  %s548_s12 = int_to_ptr.vmem [resolvable:$false] %s547_s12 }
  0x1f   : > { %s549_s13 = scalar_lea.vmem %s548_s12, 32  ;;  %p550_p1 = scmp.lt.s32.totalorder %s740_s28, %s548_s12 }
  0x20   : > { %v262_v7 = vsel %vm260_vm1, %v249_v6, 0  ;;  %p546_p0 = pneg %p545_p13  ;;  %p551_p2 = scmp.lt.s32.totalorder %s549_s13, %s543_s10 }
  0x21   : > { %469 = vmatpush3.bf16.msra.mxu0 %v262_v7 }
  0x22   : > { %p552_p3 = por %p551_p2, %p550_p1 }
  0x24   : > { %471 = vmatmul.mubr.msk.bf16.vlgmr.msra.gmra.mrb[0].mxu0 %vm256_vm2, %v247_v8  ;;  %p553_p5 = pnand %p552_p3, %p546_p0 }
  0x93   : > { %v254_v9 = vpop.permute.xlu0 %253 }
  0x97   : > { %v317_v26 = vpop.permute.xlu0 %316 }
  0x98   : > { %v322_v27 = vrot.slane %v317_v26, %v321_v25 }
  0xf7   : > { %v298_v10 = vpop.f32.mrb[0].mxu0 }
  0xf8   : > { %v299_v11 = vadd.f32 %v298_v10, %v254_v9  ;;  %v472_v12 = vpop.f32.mrb[1].mxu0 }
  0xf9   : > { %v301_v13 = vpop.f32.mrb[2].mxu0 }
  0xfa   : > { %v459_v14 = vmul.f32 -1.442695, %v299_v11  ;;  %v473_v15 = vpop.f32.mrb[3].mxu0 }
  0xfc   : > { %539 = vpow2.f32 %v459_v14 }
 0x106   : > { %v540_v16 = vpop.eup %539 }
 0x107   : > { %v307_v17 = vadd.f32 1.0, %v540_v16 }
 0x109   : > { %541 = vrcp.f32 %v307_v17 }
 0x113   : > { %v542_v18 = vpop.eup %541 }
 0x114   : > { %v310_v19 = vmul.f32 %v542_v18, %v299_v11 }
 0x116   : > { %v312_v20 = vpack.c.bf16 %v310_v19, %v310_v19 }
 0x118   : > { %v327_v21 = vsel %vm260_vm1, %v312_v20, 0 }
 0x119   : > { %475 = vmatpush3.bf16.msra.mxu1 %v327_v21 }
 0x11c   : > { %477 = vmatmul.mubr.msk.bf16.vlgmr.msra.gmra.mrb[0].mxu1 %vm256_vm2, %v311_v22 }
 0x1ef   : > { %v363_v28 = vpop.f32.mrb[0].mxu1 }
 0x1f0   : > { %v364_v29 = vadd.f32 %v363_v28, %v322_v27  ;;  %v478_v30 = vpop.f32.mrb[1].mxu1 }
 0x1f1   : > { %v366_v31 = vpop.f32.mrb[2].mxu1 }
 0x1f2   : > { %v479_v32 = vpop.f32.mrb[3].mxu1  ;;  %370 = vst.msk [vmem:[%s238_s26] sm:$0x1] %vm369_vm3, %v364_v29 }
 0x1f3   : > { %556 = shalt.err (!%p553_p5)
}
 0x1f4   : > { %s557_s14 = scalar_lea.hbm %s738_s9, 16  ;;  %s561_s17 = scalar_lea.hbm %s790_s5, 32 }
 0x1f5   : > { %p558_p6 = scmp.ne.s32.totalorder %s738_s9, %s557_s14  ;;  %p562_p10 = scmp.lt.u32.totalorder %s738_s9, %s790_s5 }
 0x1f6   : > { %p563_p11 = scmp.lt.u32.totalorder %s561_s17, %s557_s14  ;;  %p565_p13 = scmp.lt.u32.totalorder %s557_s14, %s738_s9 }
 0x1f7   : > { %p559_p7 = pnand %p558_p6, %p700_p4 }
 0x1f8   : > { %p564_p12 = por %p563_p11, %p562_p10 }
 0x1f9   : > { %p560_p9 = pneg %p559_p7 }
 0x1fa   : > { %p566_p0 = por %p565_p13, %p564_p12 }
 0x1fc   : > { %p567_p1 = pnand %p566_p0, %p560_p9 }
 0x1fe   : > { %570 = shalt.err (!%p567_p1)
}
 0x1ff   : > { %480 = dma.vmem_to_hbm [thread:$0]  (%p700_p4), %s740_s28, 16, %s738_s9, %s372_s23  }
 0x200 PF: > { %p486_p2 = scmp.ge.s32.totalorder %s621_s25, 2  ;;  %s397_s4 = sand.u32 1, %s601_s20  }
 0x201   : > { %s398_s26 = scalar_lea.sflag [#allocation4], %s397_s4 }
 0x202   : > { %p483_p3 = pnand %p486_p2, %p707_p8 }
 0x204   : > { %596 = dma.done.wait (!%p483_p3), %s398_s26, 16  }
 0x205   : > { %598 = vsyncadd (!%p483_p3), %s398_s26, 4294967280  ;;  %s20_s25 = sadd.s32 1, %s621_s25   ;;  %s793_s20 = smov %s605_s21 }
 0x206   : > { %p17_p5 = scmp.ge.s32.totalorder %s20_s25, 4   ;;  %s794_s21 = smov %s609_s22 }
 0x207   : > { %s795_s22 = smov %s713_s7  ;;  %s796_s23 = smov %s617_s24 }
 0x208   : > { %s797_s24 = smov %s799_s27  ;;  %19 = sbr.rel (!%p17_p5) target bundleno = 7 (0x7), region = 75 }
 0x20f   :  { %402 = vsyncpa [#allocation4], 1 }
 0x210   :  { %404 = vsyncpa [#allocation4 + $0x1], 1 }

// kernel: _lambda_.11
= control target key start
LH: loop header
LB: loop body
LE: loop exit
PB: predicated region body
PF: predicated region fallthrough
CT: control target
= control target key end

     0   :  { %s1037_s13 = smov 0   ;;  %s1039_s14 = smov 0   ;;  %s1108_s0 = inlined_call_operand.vmem [shape: f32[2,8,64], index: 0, kind: input, shape index: {}, may-alias: {0,9}]   ;;  %s1109_s1 = inlined_call_operand.vmem [shape: f32[2,8,64], index: 1, kind: input, shape index: {}, may-alias: {1,10}]   ;;  %s1110_s2 = inlined_call_operand.vmem [shape: f32[2,4,64], index: 2, kind: input, shape index: {}]   ;;  %s1111_s3 = inlined_call_operand.vmem [shape: f32[2,4,64], index: 3, kind: input, shape index: {}]   ;;  %s1112_s4 = inlined_call_operand.vmem [shape: f32[2,8,64], index: 4, kind: input, shape index: {}]   ;;  %s1113_s5 = inlined_call_operand.vmem [shape: f32[2,8,64], index: 5, kind: input, shape index: {}]   ;;  %s1114_s6 = inlined_call_operand.vmem [shape: bf16[8,4], index: 6, kind: input, shape index: {}]   ;;  %s1115_s7 = inlined_call_operand.vmem [shape: bf16[16,8], index: 7, kind: input, shape index: {}]   ;;  %s1116_s8 = inlined_call_operand.vmem [shape: f32[16,1], index: 8, kind: input, shape index: {}]   ;;  %s1117_s9 = inlined_call_operand.vmem [shape: f32[2,8,64], index: 9, kind: output, shape index: {0}, may-alias: {0,9}]   ;;  %s1118_s10 = inlined_call_operand.vmem [shape: f32[2,8,64], index: 10, kind: output, shape index: {1}, may-alias: {1,10}]  }
   0x1   :  { %s1041_s15 = smov 0  }
   0x2 LB: > { %s33_s16 = sadd.s32 1, %s973_s14  ;;  %p889_p0 = scmp.ge.s32.totalorder %s977_s15, 1  ;;  %s977_s15 = sphi %s1041_s15, %s21_s15   ;;  %s973_s14 = sphi %s1039_s14, %s1120_s14   ;;  %s969_s13 = sphi %s1037_s13, %s1119_s13  }
   0x3   : > { %p35_p1 = scmp.ge.s32.totalorder %s33_s16, 2  ;;  %p405_p2 = scmp.lt.s32.totalorder %s977_s15, 3 }
   0x5   : > { %s1122_s16 = smov (%p35_p1, %s33_s16), 0  ;;  %p406_p3 = pnand %p889_p0, %p405_p2 }
   0x6   : > { %p489_p4 = scmp.lt.s32.totalorder (!%p406_p3), %s969_s13, 1  ;;  %v979_v0 = vmov (!%p406_p3), 0.0   ;;  %vm980_vm0 = vmmov (!%p406_p3), 0   ;;  %vm555_vm1 = vcmask (!%p406_p3), 1041408   ;;  %v550_v6 = vld [vmem:[%s1114_s6] sm:$0xf] (!%p406_p3) }
   0x7   : > { %409 = sbr.rel (%p406_p3) target bundleno = 497 (0x1f1), region = 56  ;;  %908 = vmatprep.subr.bf16.mxu0 (!%p406_p3), %v979_v0  ;;  %910 = vmatprep.mubr.msk.bf16.mxu0 (!%p406_p3), %vm980_vm0, %v979_v0  ;;  %vm551_vm2 = vcmask (!%p406_p3), 31744   ;;  %v622_v7 = vld [vmem:[%s1116_s8] sm:$0xff] (!%p406_p3)  ;;  %v981_v8 = vmov (!%p406_p3), 0   ;;  %v623_v9 = vld [vmem:[%s1116_s8 + $0x8] sm:$0xff] (!%p406_p3)  ;;  %vm605_vm3 = vcmask (!%p406_p3), 1043456  }
   0x8   : > { %914 = vmatprep.subr.bf16.mxu1 (!%p406_p3), %v979_v0  ;;  %916 = vmatprep.mubr.msk.bf16.mxu1 (!%p406_p3), %vm980_vm0, %v979_v0  ;;  %v948_v29 = vld [vmem:[%s1115_s7] sm:$0xff] (!%p406_p3)   ;;  %vm639_vm4 = vcmask (!%p406_p3), 64512   ;;  %vm690_vm5 = vcmask (!%p406_p3), 523264  }
   0x9   : > { %947 = vset.pattern.permute.xlu0 (!%p406_p3), %v981_v8 }
   0xa   : > { %626 = vperm.xlu0 (!%p406_p3), %947, %v622_v7  }
   0xe   : > { %s1124_s13 = smov (!%p489_p4, %s969_s13), 1  ;;  %631 = vperm.xlu0 %947, %v623_v9  }
   0xf   : > { %s892_s17 = sshll.u32 %s1124_s13, 2  ;;  %s1070_s30 = sshll.u32 %s1124_s13, 3 }
  0x10   : > { %s509_s20 = scalar_lea.vmem %s1110_s2, %s892_s17  ;;  %s516_s23 = scalar_lea.vmem %s1111_s3, %s892_s17 }
  0x11   : > { %v546_v1 = vld [vmem:[%s509_s20] sm:$0xf]  ;;  %s523_s17 = scalar_lea.vmem %s1112_s4, %s1070_s30  ;;  %s530_s20 = scalar_lea.vmem %s1113_s5, %s1070_s30 }
  0x12   : > { %v547_v2 = vld [vmem:[%s516_s23] sm:$0xf]  ;;  %s495_s24 = scalar_lea.vmem %s1108_s0, %s1070_s30  ;;  %s502_s27 = scalar_lea.vmem %s1109_s1, %s1070_s30 }
  0x13   : > { %v548_v3 = vadd.f32 %v547_v2, %v546_v1  ;;  %v599_v10 = vld [vmem:[%s523_s17] sm:$0xff]  ;;  %s537_s11 = scalar_lea.vmem %s1117_s9, %s1070_s30  ;;  %s544_s18 = scalar_lea.vmem %s1118_s10, %s1070_s30 }
  0x14   : > { %v601_v17 = vld [vmem:[%s530_s20] sm:$0xff] }
  0x15   : > { %v549_v4 = vpack.c.bf16 %v548_v3, %v548_v3  ;;  %v608_v20 = vrot.slane %v601_v17, 4  ;;  %v687_v32 = vld [vmem:[%s495_s24] sm:$0xff] }
  0x16   : > { %v692_v37 = vld [vmem:[%s502_s27] sm:$0xff] }
  0x17   : > { %v557_v5 = vsel %vm555_vm1, %v549_v4, 0 }
  0x18   : > { %909 = vmatpush3.bf16.msra.mxu0 %v557_v5 }
  0x1b   : > { %911 = vmatmul.mubr.msk.bf16.vlgmr.msra.gmra.mrb[0].mxu0 %vm551_vm2, %v550_v6 }
  0x89   : > { %v627_v30 = vpop.permute.xlu0 %626 }
  0x8d   : > { %v632_v35 = vpop.permute.xlu0 %631 }
  0xee   : > { %v593_v11 = vpop.f32.mrb[0].mxu0 }
  0xef   : > { %v600_v12 = vadd.f32 %v599_v10, %v593_v11  ;;  %v912_v13 = vpop.f32.mrb[1].mxu0 }
  0xf0   : > { %v596_v14 = vpop.f32.mrb[2].mxu0 }
  0xf1   : > { %v603_v15 = vrot.slane %v600_v12, 4  ;;  %v913_v16 = vpop.f32.mrb[3].mxu0  ;;  %v610_v21 = vsel %vm605_vm3, %v608_v20, %v600_v12 }
  0xf3   : > { %v606_v18 = vsel %vm605_vm3, %v601_v17, %v603_v15 }
  0xf4   : > { %v899_v19 = vmul.f32 -1.442695, %v606_v18 }
  0xf6   : > { %949 = vpow2.f32 %v899_v19 }
  0xf7   : > { %951 = vtanh.f32 %v610_v21 }
 0x100   : > { %v950_v22 = vpop.eup %949 }
 0x101   : > { %v614_v23 = vadd.f32 1.0, %v950_v22  ;;  %v952_v24 = vpop.eup %951 }
 0x103   : > { %953 = vrcp.f32 %v614_v23 }
 0x10d   : > { %v954_v25 = vpop.eup %953 }
 0x10e   : > { %v618_v26 = vmul.f32 %v954_v25, %v952_v24 }
 0x110   : > { %v621_v27 = vpack.c.bf16 %v618_v26, %v618_v26 }
 0x112   : > { %v644_v28 = vsel %vm605_vm3, %v621_v27, 0 }
 0x113   : > { %915 = vmatpush3.bf16.msra.mxu1 %v644_v28 }
 0x116   : > { %917 = vmatmul.mubr.msk.bf16.vlgmr.msra.gmra.mrb[0].mxu1 %vm639_vm4, %v948_v29 }
 0x1e9   : > { %v680_v31 = vpop.f32.mrb[0].mxu1 }
 0x1ea   : > { %v681_v33 = vadd.f32 %v680_v31, %v627_v30  ;;  %v918_v34 = vpop.f32.mrb[1].mxu1 }
 0x1eb   : > { %v683_v36 = vpop.f32.mrb[2].mxu1 }
 0x1ec   : > { %v688_v38 = vadd.f32 %v687_v32, %v681_v33  ;;  %v684_v39 = vadd.f32 %v683_v36, %v632_v35  ;;  %v919_v40 = vpop.f32.mrb[3].mxu1 }
 0x1ee   : > { %v689_v41 = vmul.f32 0.70710677, %v688_v38  ;;  %v693_v42 = vadd.f32 %v692_v37, %v684_v39 }
 0x1f0   : > { %691 = vst.msk [vmem:[%s537_s11] sm:$0xff] %vm690_vm5, %v689_v41  ;;  %694 = vst.msk [vmem:[%s544_s18] sm:$0xff] %vm690_vm5, %v693_v42 }
 0x1f1 PF: > { %s21_s15 = sadd.s32 1, %s977_s15   ;;  %s1119_s13 = smov %s973_s14 }
 0x1f2   : > { %p18_p5 = scmp.ge.s32.totalorder %s21_s15, 4   ;;  %s1120_s14 = smov %s1122_s16 }
 0x1f4   :  { %20 = sbr.rel (!%p18_p5) target bundleno = 2 (0x2), region = 113 }

</bundles_post_ra>
